<compile_context>
chip_gen: v6e
topology: v6e:2x2x1
jax: 0.10.0
libtpu: 0.0.40
codegen_flags: <defaults>
</compile_context>

<pallas_src>
import functools

import jax
import jax.numpy as jnp
from jax.experimental import pallas as pl
from jax.experimental.pallas import tpu as pltpu


# ---------------------------------------------------------------------------
# Host-side constant builders / budgeting helpers.
# ---------------------------------------------------------------------------
def _banded_conv_matrix(k, length):
    """(L, L) matrix A with z = m @ A == conv1d(m, k, padding=1)."""
    i = jnp.arange(length)[:, None]
    j = jnp.arange(length)[None, :]
    return (k[0] * (i == j - 1) + k[1] * (i == j) + k[2] * (i == j + 1)).astype(jnp.float32)


def _selector_matrices(h, w):
    """M_h: (HW, H), M_h[p, i] = 1 iff p // W == i  (row-major p = h*W + w).
       M_w: (HW, W), M_w[p, j] = 1 iff p %  W == j."""
    p = jnp.arange(h * w)
    m_h = (p[:, None] // w == jnp.arange(h)[None, :]).astype(jnp.float32)
    m_w = (p[:, None] % w == jnp.arange(w)[None, :]).astype(jnp.float32)
    return m_h, m_w


def _vmem_capacity_bytes():
    try:
        cap = int(getattr(pltpu.get_tpu_info(), "vmem_capacity_bytes", 0))
        if cap > 0:
            return cap
    except Exception:
        pass
    return 64 * 1024 * 1024          # conservative floor (v7x has the smallest VMEM)


def _sublane_multiple(dtype):
    return {4: 8, 2: 16, 1: 32}.get(jnp.dtype(dtype).itemsize, 8)


def _pick_block_c(C, HW, itemsize, sub_mult, target_bytes):
    """Largest channel tile <= target_bytes that divides C and keeps the
    lane-dense (block_c, HW) block on native (sublane, 128) tiling."""
    max_c = max(1, target_bytes // max(1, HW * itemsize))
    for mult in (sub_mult, 8):       # prefer native packing, fall back to the hard rule
        for cand in range(min(C, max_c), 0, -1):
            if C % cand == 0 and (cand % mult == 0 or cand == C):
                return cand
    for cand in range(1, C + 1):     # last resort: smallest legal divisor
        if C % cand == 0 and (cand % 8 == 0 or cand == C):
            return cand
    return C


# ---------------------------------------------------------------------------
# Fused kernel: pooled stats + gates + scale application on a resident block.
# ---------------------------------------------------------------------------
def _mca_fused_kernel(x_ref, mix_ref, mh_ref, mw_ref, ah_ref, aw_ref, o_ref,
                      *, c, h, w):
    xb = x_ref[0].astype(jnp.float32)                    # (C, HW)
    mh = mh_ref[...]                                     # (HW, H)
    mw = mw_ref[...]                                     # (HW, W)
    mh_t = mh.T                                          # (H, HW)
    mw_t = mw.T                                          # (W, HW)
    n_h = float(c * w)                                   # pool size per (b, h)
    n_w = float(c * h)                                   # pool size per (b, w)

    # Pass 1: means — one sublane reduce over channels, then tiny MXU matmuls.
    csum = jnp.sum(xb, axis=0, keepdims=True)            # (1, HW)
    mean_h = jnp.dot(csum, mh, preferred_element_type=jnp.float32) * (1.0 / n_h)
    mean_w = jnp.dot(csum, mw, preferred_element_type=jnp.float32) * (1.0 / n_w)

    # Pass 2: two-pass unbiased variance (torch .std default). Broadcasting the
    # per-h / per-w means back to the lane-dense layout is mean @ M^T.
    mean_h_hw = jnp.dot(mean_h, mh_t, preferred_element_type=jnp.float32)  # (1, HW)
    mean_w_hw = jnp.dot(mean_w, mw_t, preferred_element_type=jnp.float32)
    dh = xb - mean_h_hw
    dw = xb - mean_w_hw
    ssq_h = jnp.dot(jnp.sum(dh * dh, axis=0, keepdims=True), mh,
                    preferred_element_type=jnp.float32)                    # (1, H)
    ssq_w = jnp.dot(jnp.sum(dw * dw, axis=0, keepdims=True), mw,
                    preferred_element_type=jnp.float32)                    # (1, W)
    std_h = jnp.sqrt(ssq_h * (1.0 / (n_h - 1.0)))
    std_w = jnp.sqrt(ssq_w * (1.0 / (n_w - 1.0)))

    # Mix coefficients (in-kernel -> one conv matrix per direction), 3-tap conv
    # as a banded matmul, sigmoid gates.
    mix = mix_ref[...]                                   # (1, 4) = [ca_h, cs_h, ca_w, cs_w]
    m_h = mean_h * mix[:, 0:1] + std_h * mix[:, 1:2]
    m_w = mean_w * mix[:, 2:3] + std_w * mix[:, 3:4]
    g_h = jax.nn.sigmoid(jnp.dot(m_h, ah_ref[...], preferred_element_type=jnp.float32))
    g_w = jax.nn.sigmoid(jnp.dot(m_w, aw_ref[...], preferred_element_type=jnp.float32))

    # Fused scale application on the still-resident x block.
    g_h_hw = jnp.dot(g_h, mh_t, preferred_element_type=jnp.float32)        # (1, HW)
    g_w_hw = jnp.dot(g_w, mw_t, preferred_element_type=jnp.float32)
    scale = 1.0 + 0.5 * (g_h_hw + g_w_hw)
    o_ref[0] = (xb * scale).astype(o_ref.dtype)


# ---------------------------------------------------------------------------
# Fallback phase 1: channel-tile accumulation of lane-dense sums + finalize.
# ---------------------------------------------------------------------------
def _mca_pool_gate_kernel(x_ref, mix_ref, mh_ref, mw_ref, ah_ref, aw_ref,
                          scale_ref, csum, csq, *, c, h, w):
    ct = pl.program_id(1)

    @pl.when(ct == 0)
    def _init():
        csum[...] = jnp.zeros_like(csum)
        csq[...] = jnp.zeros_like(csq)

    xb = x_ref[0].astype(jnp.float32)                    # (block_c, HW)
    csum[...] += jnp.sum(xb, axis=0, keepdims=True)      # (1, HW)
    csq[...] += jnp.sum(xb * xb, axis=0, keepdims=True)  # (1, HW)

    @pl.when(ct == pl.num_programs(1) - 1)
    def _finalize():
        mh = mh_ref[...]
        mw = mw_ref[...]
        n_h = float(c * w)
        n_w = float(c * h)
        s = csum[...]
        sq = csq[...]
        hsum = jnp.dot(s, mh, preferred_element_type=jnp.float32)          # (1, H)
        wsum = jnp.dot(s, mw, preferred_element_type=jnp.float32)          # (1, W)
        hsq = jnp.dot(sq, mh, preferred_element_type=jnp.float32)
        wsq = jnp.dot(sq, mw, preferred_element_type=jnp.float32)
        mean_h = hsum * (1.0 / n_h)
        mean_w = wsum * (1.0 / n_w)
        # TODO(synk): one-pass sum-of-squares variance can cancel for very large
        # C*H*W with |mean| >> std; the fused path uses a two-pass variance.
        var_h = jnp.maximum(hsq - hsum * mean_h, 0.0) * (1.0 / (n_h - 1.0))
        var_w = jnp.maximum(wsq - wsum * mean_w, 0.0) * (1.0 / (n_w - 1.0))
        std_h = jnp.sqrt(var_h)
        std_w = jnp.sqrt(var_w)
        mix = mix_ref[...]
        m_h = mean_h * mix[:, 0:1] + std_h * mix[:, 1:2]
        m_w = mean_w * mix[:, 2:3] + std_w * mix[:, 3:4]
        g_h = jax.nn.sigmoid(jnp.dot(m_h, ah_ref[...], preferred_element_type=jnp.float32))
        g_w = jax.nn.sigmoid(jnp.dot(m_w, aw_ref[...], preferred_element_type=jnp.float32))
        g_h_hw = jnp.dot(g_h, mh.T, preferred_element_type=jnp.float32)    # (1, HW)
        g_w_hw = jnp.dot(g_w, mw.T, preferred_element_type=jnp.float32)
        scale_ref[0] = 1.0 + 0.5 * (g_h_hw + g_w_hw)


# ---------------------------------------------------------------------------
# Fallback phase 2: lane-dense elementwise scale application.
# ---------------------------------------------------------------------------
def _mca_scale_kernel(x_ref, s_ref, o_ref):
    # x_ref: (1, block_c, HW); s_ref: (1, 1, HW) f32 -> wide, unmasked stores.
    o_ref[...] = (x_ref[...] * s_ref[...]).astype(o_ref.dtype)


# ---------------------------------------------------------------------------
# Wrapper.
# ---------------------------------------------------------------------------
def mca_layer(x, conv_h, mix_h, conv_w, mix_w, *, block_c=None, force_two_phase=False):
    """MCALayer forward (no_spatial=True). x: (B, C, H, W)."""
    # TODO(synk): the no_spatial=False branch (third MCAGate over the channel
    # dim with a data-dependent kernel size) is not built by the default module
    # config and is not implemented here.
    B, C, H, W = x.shape
    HW = H * W
    assert C * W > 1 and C * H > 1, "unbiased std needs >= 2 pooled elements"
    itemsize = jnp.dtype(x.dtype).itemsize

    cap = _vmem_capacity_bytes()
    vmem_limit = max(32 * 1024 * 1024, min(cap * 3 // 4, 100 * 1024 * 1024))

    # Constants: mix coefficients (0.5 + sigmoid(w)) as one (1, 4) row, a single
    # banded conv matrix per direction, and the 0/1 h/w selector matrices.
    sh = jax.nn.sigmoid(mix_h.astype(jnp.float32))
    sw = jax.nn.sigmoid(mix_w.astype(jnp.float32))
    mixv = jnp.stack([0.5 + sh[0], 0.5 + sh[1], 0.5 + sw[0], 0.5 + sw[1]]).reshape(1, 4)
    a_h = _banded_conv_matrix(conv_h.astype(jnp.float32), H)
    a_w = _banded_conv_matrix(conv_w.astype(jnp.float32), W)
    m_h, m_w = _selector_matrices(H, W)

    x3 = x.reshape(B, C, HW)                             # lane-dense view

    const_bytes = 4 * (HW * (H + W) + H * H + W * W + 4)
    xblk_bytes = C * HW * itemsize
    # double-buffered in+out x blocks + constants + f32 working-copy headroom
    fused_bytes = 4 * xblk_bytes + 2 * const_bytes + 3 * C * HW * 4
    use_fused = (not force_two_phase) and fused_bytes <= vmem_limit

    if use_fused:
        kernel = functools.partial(_mca_fused_kernel, c=C, h=H, w=W)
        out3 = pl.pallas_call(
            kernel,
            out_shape=jax.ShapeDtypeStruct((B, C, HW), x.dtype),
            grid=(B,),
            in_specs=[
                pl.BlockSpec((1, C, HW), lambda b: (b, 0, 0)),
                pl.BlockSpec((1, 4), lambda b: (0, 0)),
                pl.BlockSpec((HW, H), lambda b: (0, 0)),
                pl.BlockSpec((HW, W), lambda b: (0, 0)),
                pl.BlockSpec((H, H), lambda b: (0, 0)),
                pl.BlockSpec((W, W), lambda b: (0, 0)),
            ],
            out_specs=pl.BlockSpec((1, C, HW), lambda b: (b, 0, 0)),
            compiler_params=pltpu.CompilerParams(
                # TODO(synk): on a 2-TC chip with B == 1 the only parallel axis
                # has extent 1; splitting H across cores would use both TCs.
                dimension_semantics=("parallel",),
                vmem_limit_bytes=vmem_limit),
            cost_estimate=pl.CostEstimate(
                flops=10 * B * C * HW,
                transcendentals=2 * B * (H + W),
                bytes_accessed=2 * B * C * HW * itemsize),
        )(x3, mixv, m_h, m_w, a_h, a_w)
        return out3.reshape(B, C, H, W)

    # -------------------- fallback: two-phase tiled path --------------------
    sub = _sublane_multiple(x.dtype)
    target_bytes = max(cap // 16, 1 << 20)               # ~8 MiB on 128 MiB, ~4 MiB on 64 MiB
    if block_c is None:
        block_c = _pick_block_c(C, HW, itemsize, sub, target_bytes)
    assert C % block_c == 0, (C, block_c)
    n_ct = C // block_c

    kernel1 = functools.partial(_mca_pool_gate_kernel, c=C, h=H, w=W)
    scale = pl.pallas_call(
        kernel1,
        out_shape=jax.ShapeDtypeStruct((B, 1, HW), jnp.float32),
        grid=(B, n_ct),
        in_specs=[
            pl.BlockSpec((1, block_c, HW), lambda b, ct: (b, ct, 0)),
            pl.BlockSpec((1, 4), lambda b, ct: (0, 0)),
            pl.BlockSpec((HW, H), lambda b, ct: (0, 0)),
            pl.BlockSpec((HW, W), lambda b, ct: (0, 0)),
            pl.BlockSpec((H, H), lambda b, ct: (0, 0)),
            pl.BlockSpec((W, W), lambda b, ct: (0, 0)),
        ],
        out_specs=pl.BlockSpec((1, 1, HW), lambda b, ct: (b, 0, 0)),
        scratch_shapes=[pltpu.VMEM((1, HW), jnp.float32),
                        pltpu.VMEM((1, HW), jnp.float32)],
        compiler_params=pltpu.CompilerParams(
            dimension_semantics=("parallel", "arbitrary"),
            vmem_limit_bytes=vmem_limit),
        cost_estimate=pl.CostEstimate(
            flops=4 * B * C * HW,
            transcendentals=2 * B * (H + W),
            bytes_accessed=B * C * HW * itemsize),
    )(x3, mixv, m_h, m_w, a_h, a_w)

    out3 = pl.pallas_call(
        _mca_scale_kernel,
        out_shape=jax.ShapeDtypeStruct((B, C, HW), x.dtype),
        grid=(B, n_ct),
        in_specs=[
            pl.BlockSpec((1, block_c, HW), lambda b, ct: (b, ct, 0)),
            pl.BlockSpec((1, 1, HW), lambda b, ct: (b, 0, 0)),
        ],
        out_specs=pl.BlockSpec((1, block_c, HW), lambda b, ct: (b, ct, 0)),
        compiler_params=pltpu.CompilerParams(
            dimension_semantics=("parallel", "parallel"),
            vmem_limit_bytes=vmem_limit),
        cost_estimate=pl.CostEstimate(
            flops=2 * B * C * HW,
            transcendentals=0,
            bytes_accessed=2 * B * C * HW * itemsize),
    )(x3, scale)
    return out3.reshape(B, C, H, W)


# ---------------------------------------------------------------------------
# Pure-JAX reference mirroring the PyTorch forward.
# ---------------------------------------------------------------------------
def reference_mca_layer(x, conv_h, mix_h, conv_w, mix_w):
    def mca_gate(y, k, mixw):
        b, ch = y.shape[0], y.shape[1]
        yf = y.reshape(b, ch, -1)
        avg = jnp.mean(yf, axis=2)
        std = jnp.std(yf, axis=2, ddof=1)                # torch .std is unbiased
        ws = jax.nn.sigmoid(mixw)
        m = 0.5 * (avg + std) + ws[0] * avg + ws[1] * std
        mpad = jnp.pad(m, ((0, 0), (1, 1)))
        z = k[0] * mpad[:, :-2] + k[1] * mpad[:, 1:-1] + k[2] * mpad[:, 2:]
        g = jax.nn.sigmoid(z)
        return y * g[:, :, None, None]

    xh = jnp.transpose(x, (0, 2, 1, 3))                  # (B, H, C, W)
    xh = mca_gate(xh, conv_h, mix_h)
    xh = jnp.transpose(xh, (0, 2, 1, 3))
    xw = jnp.transpose(x, (0, 3, 2, 1))                  # (B, W, H, C)
    xw = mca_gate(xw, conv_w, mix_w)
    xw = jnp.transpose(xw, (0, 3, 2, 1))
    return 0.5 * (xh + xw) + x


if __name__ == "__main__":
    B, C, H, W = 2, 32, 16, 16                           # HW = 256 -> lane-dense
    key = jax.random.PRNGKey(0)
    kx, k1, k2, k3, k4 = jax.random.split(key, 5)

    x = jax.random.normal(kx, (B, C, H, W), dtype=jnp.float32)
    conv_h = jax.random.normal(k1, (3,), dtype=jnp.float32) * 0.5   # Conv2d(1,1,(1,3)) weight
    mix_h = jax.random.uniform(k2, (2,), dtype=jnp.float32)         # MCAGate.weight (h_cw)
    conv_w = jax.random.normal(k3, (3,), dtype=jnp.float32) * 0.5
    mix_w = jax.random.uniform(k4, (2,), dtype=jnp.float32)         # MCAGate.weight (w_hc)

    ref = reference_mca_layer(x, conv_h, mix_h, conv_w, mix_w)

    # Primary fused single-kernel path.
    out = jax.block_until_ready(mca_layer(x, conv_h, mix_h, conv_w, mix_w))
    assert out.shape == (B, C, H, W)
    err = float(jnp.max(jnp.abs(out - ref)))
    assert err < 1e-4, err

    # Exercise the tiled two-phase fallback (multi-tile accumulate/finalize).
    out2 = jax.block_until_ready(
        mca_layer(x, conv_h, mix_h, conv_w, mix_w, force_two_phase=True, block_c=8))
    err2 = float(jnp.max(jnp.abs(out2 - ref)))
    assert err2 < 1e-4, err2

    print("KERNEL_OK")
</pallas_src>

<mosaic_0001>
module attributes {stable_mosaic.version = 11 : i64} {
  func.func @_mca_fused_kernel(%arg0: i32, %arg1: memref<1x32x256xf32, #tpu.memory_space<vmem>>, %arg2: memref<1x4xf32, #tpu.memory_space<vmem>>, %arg3: memref<256x16xf32, #tpu.memory_space<vmem>>, %arg4: memref<256x16xf32, #tpu.memory_space<vmem>>, %arg5: memref<16x16xf32, #tpu.memory_space<vmem>>, %arg6: memref<16x16xf32, #tpu.memory_space<vmem>>, %arg7: memref<1x32x256xf32, #tpu.memory_space<vmem>>) attributes {dimension_semantics = [#tpu.dimension_semantics<parallel>], iteration_bounds = array<i64: 2>, scalar_prefetch = 0 : i64, scratch_operands = 0 : i64, tpu.core_type = #tpu.core_type<tc>, window_params = [{transform_indices = @transform_0, window_bounds = array<i64: 1, 32, 256>}, {pipeline_mode = #tpu.pipeline_mode<synchronous>, transform_indices = @transform_1, window_bounds = array<i64: 1, 4>}, {pipeline_mode = #tpu.pipeline_mode<synchronous>, transform_indices = @transform_2, window_bounds = array<i64: 256, 16>}, {pipeline_mode = #tpu.pipeline_mode<synchronous>, transform_indices = @transform_3, window_bounds = array<i64: 256, 16>}, {pipeline_mode = #tpu.pipeline_mode<synchronous>, transform_indices = @transform_4, window_bounds = array<i64: 16, 16>}, {pipeline_mode = #tpu.pipeline_mode<synchronous>, transform_indices = @transform_5, window_bounds = array<i64: 16, 16>}, {transform_indices = @transform_6, window_bounds = array<i64: 1, 32, 256>}]} {
    %c0 = arith.constant 0 : index
    %c0_0 = arith.constant 0 : index
    %c0_1 = arith.constant 0 : index
    %0 = vector.load %arg1[%c0, %c0_0, %c0_1] : memref<1x32x256xf32, #tpu.memory_space<vmem>>, vector<1x32x256xf32>
    %1 = vector.shape_cast %0 : vector<1x32x256xf32> to vector<32x256xf32>
    %c0_2 = arith.constant 0 : index
    %c0_3 = arith.constant 0 : index
    %2 = vector.load %arg3[%c0_2, %c0_3] : memref<256x16xf32, #tpu.memory_space<vmem>>, vector<256x16xf32>
    %c0_4 = arith.constant 0 : index
    %c0_5 = arith.constant 0 : index
    %3 = vector.load %arg4[%c0_4, %c0_5] : memref<256x16xf32, #tpu.memory_space<vmem>>, vector<256x16xf32>
    %4 = tpu.transpose %2, [1, 0] : vector<256x16xf32> -> vector<16x256xf32>
    %5 = tpu.transpose %3, [1, 0] : vector<256x16xf32> -> vector<16x256xf32>
    %cst = arith.constant dense<0.000000e+00> : vector<256xf32>
    %6 = vector.multi_reduction <add>, %1, %cst [0] : vector<32x256xf32> to vector<256xf32>
    %7 = vector.shape_cast %6 : vector<256xf32> to vector<1x256xf32>
    %cst_6 = arith.constant dense<0.000000e+00> : vector<1x16xf32>
    %8 = tpu.matmul %7, %2, %cst_6 {dimension_numbers = #tpu.dot_dimension_numbers<[1], [0], [0], [1], [0, 0, 1, 1], [], []>} : vector<1x256xf32>, vector<256x16xf32>, vector<1x16xf32> -> vector<1x16xf32>
    %cst_7 = arith.constant 0.001953125 : f32
    %9 = vector.broadcast %cst_7 : f32 to vector<1x16xf32>
    %10 = arith.mulf %8, %9 : vector<1x16xf32>
    %cst_8 = arith.constant dense<0.000000e+00> : vector<1x16xf32>
    %11 = tpu.matmul %7, %3, %cst_8 {dimension_numbers = #tpu.dot_dimension_numbers<[1], [0], [0], [1], [0, 0, 1, 1], [], []>} : vector<1x256xf32>, vector<256x16xf32>, vector<1x16xf32> -> vector<1x16xf32>
    %cst_9 = arith.constant 0.001953125 : f32
    %12 = vector.broadcast %cst_9 : f32 to vector<1x16xf32>
    %13 = arith.mulf %11, %12 : vector<1x16xf32>
    %cst_10 = arith.constant dense<0.000000e+00> : vector<1x256xf32>
    %14 = tpu.matmul %10, %4, %cst_10 {dimension_numbers = #tpu.dot_dimension_numbers<[1], [0], [0], [1], [0, 0, 1, 1], [], []>} : vector<1x16xf32>, vector<16x256xf32>, vector<1x256xf32> -> vector<1x256xf32>
    %cst_11 = arith.constant dense<0.000000e+00> : vector<1x256xf32>
    %15 = tpu.matmul %13, %5, %cst_11 {dimension_numbers = #tpu.dot_dimension_numbers<[1], [0], [0], [1], [0, 0, 1, 1], [], []>} : vector<1x16xf32>, vector<16x256xf32>, vector<1x256xf32> -> vector<1x256xf32>
    %16 = vector.broadcast %14 : vector<1x256xf32> to vector<32x256xf32>
    %17 = arith.subf %1, %16 : vector<32x256xf32>
    %18 = vector.broadcast %15 : vector<1x256xf32> to vector<32x256xf32>
    %19 = arith.subf %1, %18 : vector<32x256xf32>
    %20 = arith.mulf %17, %17 : vector<32x256xf32>
    %cst_12 = arith.constant dense<0.000000e+00> : vector<256xf32>
    %21 = vector.multi_reduction <add>, %20, %cst_12 [0] : vector<32x256xf32> to vector<256xf32>
    %22 = vector.shape_cast %21 : vector<256xf32> to vector<1x256xf32>
    %cst_13 = arith.constant dense<0.000000e+00> : vector<1x16xf32>
    %23 = tpu.matmul %22, %2, %cst_13 {dimension_numbers = #tpu.dot_dimension_numbers<[1], [0], [0], [1], [0, 0, 1, 1], [], []>} : vector<1x256xf32>, vector<256x16xf32>, vector<1x16xf32> -> vector<1x16xf32>
    %24 = arith.mulf %19, %19 : vector<32x256xf32>
    %cst_14 = arith.constant dense<0.000000e+00> : vector<256xf32>
    %25 = vector.multi_reduction <add>, %24, %cst_14 [0] : vector<32x256xf32> to vector<256xf32>
    %26 = vector.shape_cast %25 : vector<256xf32> to vector<1x256xf32>
    %cst_15 = arith.constant dense<0.000000e+00> : vector<1x16xf32>
    %27 = tpu.matmul %26, %3, %cst_15 {dimension_numbers = #tpu.dot_dimension_numbers<[1], [0], [0], [1], [0, 0, 1, 1], [], []>} : vector<1x256xf32>, vector<256x16xf32>, vector<1x16xf32> -> vector<1x16xf32>
    %cst_16 = arith.constant 0.00195694715 : f32
    %28 = vector.broadcast %cst_16 : f32 to vector<1x16xf32>
    %29 = arith.mulf %23, %28 : vector<1x16xf32>
    %30 = math.sqrt %29 : vector<1x16xf32>
    %cst_17 = arith.constant 0.00195694715 : f32
    %31 = vector.broadcast %cst_17 : f32 to vector<1x16xf32>
    %32 = arith.mulf %27, %31 : vector<1x16xf32>
    %33 = math.sqrt %32 : vector<1x16xf32>
    %c0_18 = arith.constant 0 : index
    %c0_19 = arith.constant 0 : index
    %34 = vector.load %arg2[%c0_18, %c0_19] : memref<1x4xf32, #tpu.memory_space<vmem>>, vector<1x4xf32>
    %35 = vector.extract_strided_slice %34 {offsets = [0, 0], sizes = [1, 1], strides = [1, 1]} : vector<1x4xf32> to vector<1x1xf32>
    %36 = vector.broadcast %35 : vector<1x1xf32> to vector<1x16xf32>
    %37 = arith.mulf %10, %36 : vector<1x16xf32>
    %38 = vector.extract_strided_slice %34 {offsets = [0, 1], sizes = [1, 1], strides = [1, 1]} : vector<1x4xf32> to vector<1x1xf32>
    %39 = vector.broadcast %38 : vector<1x1xf32> to vector<1x16xf32>
    %40 = arith.mulf %30, %39 : vector<1x16xf32>
    %41 = arith.addf %37, %40 : vector<1x16xf32>
    %42 = vector.extract_strided_slice %34 {offsets = [0, 2], sizes = [1, 1], strides = [1, 1]} : vector<1x4xf32> to vector<1x1xf32>
    %43 = vector.broadcast %42 : vector<1x1xf32> to vector<1x16xf32>
    %44 = arith.mulf %13, %43 : vector<1x16xf32>
    %45 = vector.extract_strided_slice %34 {offsets = [0, 3], sizes = [1, 1], strides = [1, 1]} : vector<1x4xf32> to vector<1x1xf32>
    %46 = vector.broadcast %45 : vector<1x1xf32> to vector<1x16xf32>
    %47 = arith.mulf %33, %46 : vector<1x16xf32>
    %48 = arith.addf %44, %47 : vector<1x16xf32>
    %c0_20 = arith.constant 0 : index
    %c0_21 = arith.constant 0 : index
    %49 = vector.load %arg5[%c0_20, %c0_21] : memref<16x16xf32, #tpu.memory_space<vmem>>, vector<16x16xf32>
    %cst_22 = arith.constant dense<0.000000e+00> : vector<1x16xf32>
    %50 = tpu.matmul %41, %49, %cst_22 {dimension_numbers = #tpu.dot_dimension_numbers<[1], [0], [0], [1], [0, 0, 1, 1], [], []>} : vector<1x16xf32>, vector<16x16xf32>, vector<1x16xf32> -> vector<1x16xf32>
    %51 = arith.negf %50 : vector<1x16xf32>
    %52 = math.exp %51 : vector<1x16xf32>
    %cst_23 = arith.constant 1.000000e+00 : f32
    %53 = vector.broadcast %cst_23 : f32 to vector<1x16xf32>
    %54 = arith.addf %53, %52 : vector<1x16xf32>
    %55 = arith.divf %53, %54 : vector<1x16xf32>
    %c0_24 = arith.constant 0 : index
    %c0_25 = arith.constant 0 : index
    %56 = vector.load %arg6[%c0_24, %c0_25] : memref<16x16xf32, #tpu.memory_space<vmem>>, vector<16x16xf32>
    %cst_26 = arith.constant dense<0.000000e+00> : vector<1x16xf32>
    %57 = tpu.matmul %48, %56, %cst_26 {dimension_numbers = #tpu.dot_dimension_numbers<[1], [0], [0], [1], [0, 0, 1, 1], [], []>} : vector<1x16xf32>, vector<16x16xf32>, vector<1x16xf32> -> vector<1x16xf32>
    %58 = arith.negf %57 : vector<1x16xf32>
    %59 = math.exp %58 : vector<1x16xf32>
    %cst_27 = arith.constant 1.000000e+00 : f32
    %60 = vector.broadcast %cst_27 : f32 to vector<1x16xf32>
    %61 = arith.addf %60, %59 : vector<1x16xf32>
    %62 = arith.divf %60, %61 : vector<1x16xf32>
    %cst_28 = arith.constant dense<0.000000e+00> : vector<1x256xf32>
    %63 = tpu.matmul %55, %4, %cst_28 {dimension_numbers = #tpu.dot_dimension_numbers<[1], [0], [0], [1], [0, 0, 1, 1], [], []>} : vector<1x16xf32>, vector<16x256xf32>, vector<1x256xf32> -> vector<1x256xf32>
    %cst_29 = arith.constant dense<0.000000e+00> : vector<1x256xf32>
    %64 = tpu.matmul %62, %5, %cst_29 {dimension_numbers = #tpu.dot_dimension_numbers<[1], [0], [0], [1], [0, 0, 1, 1], [], []>} : vector<1x16xf32>, vector<16x256xf32>, vector<1x256xf32> -> vector<1x256xf32>
    %65 = arith.addf %63, %64 : vector<1x256xf32>
    %cst_30 = arith.constant 5.000000e-01 : f32
    %66 = vector.broadcast %cst_30 : f32 to vector<1x256xf32>
    %67 = arith.mulf %66, %65 : vector<1x256xf32>
    %cst_31 = arith.constant 1.000000e+00 : f32
    %68 = vector.broadcast %cst_31 : f32 to vector<1x256xf32>
    %69 = arith.addf %68, %67 : vector<1x256xf32>
    %70 = vector.broadcast %69 : vector<1x256xf32> to vector<32x256xf32>
    %71 = arith.mulf %1, %70 : vector<32x256xf32>
    %c0_32 = arith.constant 0 : index
    %c0_33 = arith.constant 0 : index
    %c0_34 = arith.constant 0 : index
    %72 = vector.load %arg7[%c0_32, %c0_33, %c0_34] : memref<1x32x256xf32, #tpu.memory_space<vmem>>, vector<1x32x256xf32>
    %73 = vector.shape_cast %72 : vector<1x32x256xf32> to vector<32x256xf32>
    %74 = vector.shape_cast %71 : vector<32x256xf32> to vector<1x32x256xf32>
    tpu.vector_store %arg7[%c0_32, %c0_33, %c0_34], %74 {strides = array<i32>} : memref<1x32x256xf32, #tpu.memory_space<vmem>>, vector<1x32x256xf32>,
    return
  }
  func.func @transform_0(%arg0: i32) -> (i32, i32, i32) {
    %c0_i32 = arith.constant 0 : i32
    %c0_i32_0 = arith.constant 0 : i32
    %c0_i32_1 = arith.constant 0 : i32
    return %arg0, %c0_i32, %c0_i32_0 : i32, i32, i32
  }
  func.func @transform_1(%arg0: i32) -> (i32, i32) {
    %c0_i32 = arith.constant 0 : i32
    %c0_i32_0 = arith.constant 0 : i32
    %c0_i32_1 = arith.constant 0 : i32
    return %c0_i32, %c0_i32_0 : i32, i32
  }
  func.func @transform_2(%arg0: i32) -> (i32, i32) {
    %c0_i32 = arith.constant 0 : i32
    %c0_i32_0 = arith.constant 0 : i32
    %c0_i32_1 = arith.constant 0 : i32
    return %c0_i32, %c0_i32_0 : i32, i32
  }
  func.func @transform_3(%arg0: i32) -> (i32, i32) {
    %c0_i32 = arith.constant 0 : i32
    %c0_i32_0 = arith.constant 0 : i32
    %c0_i32_1 = arith.constant 0 : i32
    return %c0_i32, %c0_i32_0 : i32, i32
  }
  func.func @transform_4(%arg0: i32) -> (i32, i32) {
    %c0_i32 = arith.constant 0 : i32
    %c0_i32_0 = arith.constant 0 : i32
    %c0_i32_1 = arith.constant 0 : i32
    return %c0_i32, %c0_i32_0 : i32, i32
  }
  func.func @transform_5(%arg0: i32) -> (i32, i32) {
    %c0_i32 = arith.constant 0 : i32
    %c0_i32_0 = arith.constant 0 : i32
    %c0_i32_1 = arith.constant 0 : i32
    return %c0_i32, %c0_i32_0 : i32, i32
  }
  func.func @transform_6(%arg0: i32) -> (i32, i32, i32) {
    %c0_i32 = arith.constant 0 : i32
    %c0_i32_0 = arith.constant 0 : i32
    %c0_i32_1 = arith.constant 0 : i32
    return %arg0, %c0_i32, %c0_i32_0 : i32, i32, i32
  }
}

</mosaic_0001>

<bundles_post_ra>
// kernel: tpu_custom_call.1
= control target key start
LH: loop header
LB: loop body
LE: loop exit
PB: predicated region body
PF: predicated region fallthrough
CT: control target
= control target key end

     0   :  { %11 = vsyncpa [#allocation3], 0  ;;  %s3059_s0 = inlined_call_operand.vmem [shape: f32[2,32,256], index: 0, kind: input, shape index: {}]   ;;  %s3060_s1 = inlined_call_operand.vmem [shape: f32[1,4], index: 1, kind: input, shape index: {}]   ;;  %s3061_s2 = inlined_call_operand.vmem [shape: f32[256,16], index: 2, kind: input, shape index: {}]   ;;  %s3062_s3 = inlined_call_operand.vmem [shape: f32[256,16], index: 3, kind: input, shape index: {}]   ;;  %s3063_s4 = inlined_call_operand.vmem [shape: f32[16,16], index: 4, kind: input, shape index: {}]   ;;  %s3064_s5 = inlined_call_operand.vmem [shape: f32[16,16], index: 5, kind: input, shape index: {}]   ;;  %s3065_s6 = inlined_call_operand.hbm [shape: f32[2,32,256], index: 6, kind: output, shape index: {}]  }
   0x1   :  { %13 = vsyncpa [#allocation3 + $0x1], 0  ;;  %s2133_s21 = smov 0   ;;  %s2135_s22 = smov 0  }
   0x2   :  { %s2137_s23 = smov 0   ;;  %s2139_s24 = smov 0  }
   0x3 LB: > { %s2154_s25 = sadd.s32 4294967295, %s2087_s24   ;;  %s1517_s26 = sadd.s32 4294967294, %s2087_s24   ;;  %s2087_s24 = sphi %s2139_s24, %s3263_s24   ;;  %s2083_s23 = sphi %s2137_s23, %s3262_s23   ;;  %s2079_s22 = sphi %s2135_s22, %s3261_s22   ;;  %s2075_s21 = sphi %s2133_s21, %s3260_s21  }
   0x4   : > { %s2158_s27 = sadd.s32 1, %s2087_s24   ;;  %s157_s28 = sadd.s32 1, %s2083_s23 }
   0x5   : > { %s154_s29 = ssub.s32 %s2087_s24, %s2158_s27  ;;  %p167_p0 = scmp.ne.s32.totalorder %s2083_s23, %s2079_s22 }
   0x6   : > { %p155_p1 = scmp.eq.s32.totalorder %s154_s29, 0  ;;  %p168_p2 = scmp.eq.s32.totalorder %s2154_s25, 1 }
   0x7   : > { %p173_p3 = scmp.ne.s32.totalorder %s2079_s22, %s2075_s21  ;;  %p174_p4 = scmp.eq.s32.totalorder %s1517_s26, 1 }
   0x8   : > { %s2169_s30 = scalar_select %p155_p1, %s2083_s23, %s157_s28  }
   0x9   : > { %p2171_p5 = por %p168_p2, %p167_p0  ;;  %p2175_p6 = por %p174_p4, %p173_p3 }
   0xa   : > { %p1520_p7 = scmp.ge.s32.totalorder %s2087_s24, 1  ;;  %p215_p8 = scmp.lt.s32.totalorder %s2087_s24, 3 }
   0xc   : > { %p216_p9 = pnand %p1520_p7, %p215_p8 }
   0xe   : > { %219 = sbr.rel (%p216_p9) target bundleno = 1153 (0x481), region = 44 }
  0x13   : > { %v2184_v0 = vld [vmem:[%s3061_s2 + $0xf8] sm:$0xff]  ;;  %v2206_v4 = vld [vmem:[%s3061_s2 + $0xf0] sm:$0xff]  ;;  %v2228_v8 = vld [vmem:[%s3061_s2 + $0xe8] sm:$0xff]  ;;  %p245_p10 = scmp.lt.s32.totalorder %s2154_s25, 1  ;;  %vm482_vm0 = vcmask 130048   ;;  %vm2094_vm1 = vmmov 0  }
  0x14   : > { %v2189_v1 = vld [vmem:[%s3062_s3 + $0xf8] sm:$0xff]  ;;  %1667 = vmatprep.subr.mxu0 %v2184_v0  ;;  %v2211_v5 = vld [vmem:[%s3062_s3 + $0xf0] sm:$0xff]  ;;  %v2235_v9 = vld [vmem:[%s3062_s3 + $0xe8] sm:$0xff]  ;;  %s242_s18 = sand.u32 1, %s2079_s22   ;;  %s1666_s26 = sshll.u32 %s2154_s25, 10 }
  0x15   : > { %v2194_v2 = vld [vmem:[%s3061_s2 + $0x78] sm:$0xff]  ;;  %1702 = vmatprep.subr.mxu1 %v2189_v1  ;;  %v2218_v6 = vld [vmem:[%s3061_s2 + $0x70] sm:$0xff]  ;;  %v2240_v10 = vld [vmem:[%s3061_s2 + $0x68] sm:$0xff]  ;;  %s2347_s20 = scalar_select %p245_p10, %s2154_s25, 1 }
  0x16   : > { %v2201_v3 = vld [vmem:[%s3062_s3 + $0x78] sm:$0xff]  ;;  %1668 = vmatpush3.msra.mxu0 %v2194_v2  ;;  %v2223_v7 = vld [vmem:[%s3062_s3 + $0x70] sm:$0xff]  ;;  %v2245_v11 = vld [vmem:[%s3062_s3 + $0x68] sm:$0xff]  ;;  %s1521_s19 = sshll.u32 %s242_s18, 6  ;;  %s3009_s11 = scalar_lea.hbm %s3065_s6, %s1666_s26 }
  0x17   : > { %1703 = vmatpush3.msra.mxu1 %v2201_v3  ;;  %1669 = vmatprep.subr.mxu0 %v2206_v4  ;;  %v2252_v12 = vld [vmem:[%s3061_s2 + $0xe0] sm:$0xff]  ;;  %v2276_v16 = vld [vmem:[%s3061_s2 + $0xd8] sm:$0xff]  ;;  %v2301_v20 = vld [vmem:[%s3061_s2 + $0xd0] sm:$0xff]  ;;  %s1665_s29 = sshll.u32 %s2347_s20, 6  ;;  %s244_s28 = scalar_lea.vmem [#allocation2], %s1521_s19 }
  0x18   : > { %1704 = vmatprep.subr.mxu1 %v2211_v5  ;;  %1670 = vmatpush3.msra.mxu0 %v2218_v6  ;;  %v2257_v13 = vld [vmem:[%s3062_s3 + $0xe0] sm:$0xff]  ;;  %v2281_v17 = vld [vmem:[%s3062_s3 + $0xd8] sm:$0xff]  ;;  %v2306_v21 = vld [vmem:[%s3062_s3 + $0xd0] sm:$0xff]  ;;  %s2447_s13 = scalar_lea.vmem %s3059_s0, %s1665_s29  ;;  %s1455_s9 = sshll.u32 %s244_s28, 4  ;;  %s3011_s9 = int_to_ptr.vmem [resolvable:$true] %s1455_s9 }
  0x19   : > { %1705 = vmatpush3.msra.mxu1 %v2223_v7  ;;  %1671 = vmatprep.subr.mxu0 %v2228_v8  ;;  %v2264_v14 = vld [vmem:[%s3061_s2 + $0x60] sm:$0xff]  ;;  %v2288_v18 = vld [vmem:[%s3061_s2 + $0x58] sm:$0xff]  ;;  %v2313_v22 = vld [vmem:[%s3061_s2 + $0x50] sm:$0xff]  ;;  %s3019_s12 = scalar_lea.sflag [#allocation3], %s242_s18  ;;  %s2095_s20 = smov [#allocation2]  }
  0x1a   : > { %1706 = vmatprep.subr.mxu1 %v2235_v9  ;;  %v2269_v15 = vld [vmem:[%s3062_s3 + $0x60] sm:$0xff]  ;;  %1672 = vmatpush3.msra.mxu0 %v2240_v10  ;;  %v2293_v19 = vld [vmem:[%s3062_s3 + $0x58] sm:$0xff]  ;;  %v2318_v23 = vld [vmem:[%s3062_s3 + $0x50] sm:$0xff]  ;;  %s2031_s14 = sshll.u32 %s2095_s20, 4  ;;  %s2032_s14 = int_to_ptr.vmem [resolvable:$false] %s2031_s14 }
  0x1b   : > { %1707 = vmatpush3.msra.mxu1 %v2245_v11  ;;  %1673 = vmatprep.subr.mxu0 %v2252_v12  ;;  %v2325_v24 = vld [vmem:[%s3061_s2 + $0xc8] sm:$0xff]  ;;  %v2354_v28 = vld [vmem:[%s3061_s2 + $0xc0] sm:$0xff]  ;;  %v2378_v32 = vld [vmem:[%s3061_s2 + $0xb8] sm:$0xff]  ;;  %s2033_s15 = scalar_lea.vmem %s2032_s14, 2048  ;;  %p2034_p0 = scmp.lt.s32.totalorder %s3011_s9, %s2032_s14 }
  0x1c   : > { %1708 = vmatprep.subr.mxu1 %v2257_v13  ;;  %1674 = vmatpush3.msra.mxu0 %v2264_v14  ;;  %v2330_v25 = vld [vmem:[%s3062_s3 + $0xc8] sm:$0xff]  ;;  %v2359_v29 = vld [vmem:[%s3062_s3 + $0xc0] sm:$0xff]  ;;  %3148 = vst [vmem:[#allocation7_spill] sm:$0xff] %v2378_v32  ;;  %v2383_v33 = vld [vmem:[%s3062_s3 + $0xb8] sm:$0xff] }
  0x1d   : > { %1709 = vmatpush3.msra.mxu1 %v2269_v15  ;;  %1675 = vmatprep.subr.mxu0 %v2276_v16  ;;  %v2337_v26 = vld [vmem:[%s3061_s2 + $0x48] sm:$0xff]  ;;  %v2366_v30 = vld [vmem:[%s3061_s2 + $0x40] sm:$0xff]  ;;  %3149 = vst [vmem:[#allocation8_spill] sm:$0xff] %v2383_v33  ;;  %v2390_v34 = vld [vmem:[%s3061_s2 + $0x38] sm:$0xff] }
  0x1e   : > { %1710 = vmatprep.subr.mxu1 %v2281_v17  ;;  %1676 = vmatpush3.msra.mxu0 %v2288_v18  ;;  %v2342_v27 = vld [vmem:[%s3062_s3 + $0x48] sm:$0xff]  ;;  %3146 = vst [vmem:[#allocation5_spill] sm:$0xff] %v2366_v30  ;;  %v2371_v31 = vld [vmem:[%s3062_s3 + $0x40] sm:$0xff]  ;;  %3150 = vst [vmem:[#allocation9_spill] sm:$0xff] %v2390_v34 }
  0x1f   : > { %1711 = vmatpush3.msra.mxu1 %v2293_v19  ;;  %1677 = vmatprep.subr.mxu0 %v2301_v20  ;;  %3147 = vst [vmem:[#allocation6_spill] sm:$0xff] %v2371_v31  ;;  %v2395_v35 = vld [vmem:[%s3062_s3 + $0x38] sm:$0xff]  ;;  %v2403_v36 = vld [vmem:[%s3061_s2 + $0xb0] sm:$0xff]  ;;  %v2425_v40 = vld [vmem:[%s3061_s2 + $0xa8] sm:$0xff] }
  0x20   : > { %1712 = vmatprep.subr.mxu1 %v2306_v21  ;;  %1678 = vmatpush3.msra.mxu0 %v2313_v22  ;;  %3151 = vst [vmem:[#allocation10_spill] sm:$0xff] %v2395_v35  ;;  %3152 = vst [vmem:[#allocation11_spill] sm:$0xff] %v2403_v36  ;;  %v2408_v37 = vld [vmem:[%s3062_s3 + $0xb0] sm:$0xff]  ;;  %v2432_v41 = vld [vmem:[%s3062_s3 + $0xa8] sm:$0xff] }
  0x21   : > { %1713 = vmatpush3.msra.mxu1 %v2318_v23  ;;  %1679 = vmatprep.subr.mxu0 %v2325_v24  ;;  %3153 = vst [vmem:[#allocation12_spill] sm:$0xff] %v2408_v37  ;;  %v2415_v38 = vld [vmem:[%s3061_s2 + $0x30] sm:$0xff]  ;;  %3156 = vst [vmem:[#allocation15_spill] sm:$0xff] %v2425_v40  ;;  %v2437_v42 = vld [vmem:[%s3061_s2 + $0x28] sm:$0xff] }
  0x22   : > { %1714 = vmatprep.subr.mxu1 %v2330_v25  ;;  %1680 = vmatpush3.msra.mxu0 %v2337_v26  ;;  %3154 = vst [vmem:[#allocation13_spill] sm:$0xff] %v2415_v38  ;;  %v2420_v39 = vld [vmem:[%s3062_s3 + $0x30] sm:$0xff]  ;;  %3157 = vst [vmem:[#allocation16_spill] sm:$0xff] %v2432_v41  ;;  %v2442_v43 = vld [vmem:[%s3062_s3 + $0x28] sm:$0xff] }
  0x23   : > { %1715 = vmatpush3.msra.mxu1 %v2342_v27  ;;  %1681 = vmatprep.subr.mxu0 %v2354_v28  ;;  %3155 = vst [vmem:[#allocation14_spill] sm:$0xff] %v2420_v39  ;;  %3158 = vst [vmem:[#allocation17_spill] sm:$0xff] %v2437_v42  ;;  %v2454_v44 = vld [vmem:[%s3061_s2 + $0xa0] sm:$0xff]  ;;  %v2476_v48 = vld [vmem:[%s3061_s2 + $0x98] sm:$0xff] }
  0x24   : > { %1716 = vmatprep.subr.mxu1 %v2359_v29  ;;  %1682 = vmatpush3.msra.mxu0 %v2366_v30  ;;  %3159 = vst [vmem:[#allocation18_spill] sm:$0xff] %v2442_v43  ;;  %3160 = vst [vmem:[#allocation19_spill] sm:$0xff] %v2454_v44  ;;  %v2459_v45 = vld [vmem:[%s3062_s3 + $0xa0] sm:$0xff]  ;;  %v2481_v49 = vld [vmem:[%s3062_s3 + $0x98] sm:$0xff] }
  0x25   : > { %1717 = vmatpush3.msra.mxu1 %v2371_v31  ;;  %1683 = vmatprep.subr.mxu0 %v2378_v32  ;;  %3161 = vst [vmem:[#allocation20_spill] sm:$0xff] %v2459_v45  ;;  %v2464_v46 = vld [vmem:[%s3061_s2 + $0x20] sm:$0xff]  ;;  %3164 = vst [vmem:[#allocation23_spill] sm:$0xff] %v2476_v48  ;;  %v2486_v50 = vld [vmem:[%s2447_s13 + $0x8] sm:$0xff] }
  0x26   : > { %1718 = vmatprep.subr.mxu1 %v2383_v33  ;;  %1684 = vmatpush3.msra.mxu0 %v2390_v34  ;;  %3162 = vst [vmem:[#allocation21_spill] sm:$0xff] %v2464_v46  ;;  %v2471_v47 = vld [vmem:[%s3062_s3 + $0x20] sm:$0xff]  ;;  %3165 = vst [vmem:[#allocation24_spill] sm:$0xff] %v2481_v49  ;;  %v2489_v51 = vld [vmem:[%s2447_s13 + $0x18] sm:$0xff] }
  0x27   : > { %1719 = vmatpush3.msra.mxu1 %v2395_v35  ;;  %1685 = vmatprep.subr.mxu0 %v2403_v36  ;;  %3163 = vst [vmem:[#allocation22_spill] sm:$0xff] %v2471_v47  ;;  %3166 = vst [vmem:[#allocation25_spill] sm:$0xff] %v2486_v50  ;;  %v2492_v52 = vld [vmem:[%s2447_s13 + $0x28] sm:$0xff]  ;;  %v2499_v53 = vld [vmem:[%s3061_s2 + $0x18] sm:$0xff]  ;;  %v331_v55 = vadd.f32 %v2489_v51, %v2486_v50 }
  0x28   : > { %1720 = vmatprep.subr.mxu1 %v2408_v37  ;;  %1686 = vmatpush3.msra.mxu0 %v2415_v38  ;;  %3167 = vst [vmem:[#allocation26_spill] sm:$0xff] %v2489_v51  ;;  %3168 = vst [vmem:[#allocation27_spill] sm:$0xff] %v2492_v52  ;;  %v2504_v54 = vld [vmem:[%s3062_s3 + $0x18] sm:$0xff]  ;;  %v2509_v56 = vld [vmem:[%s2447_s13] sm:$0xff] }
  0x29   : > { %1721 = vmatpush3.msra.mxu1 %v2420_v39  ;;  %1687 = vmatprep.subr.mxu0 %v2425_v40  ;;  %3169 = vst [vmem:[#allocation28_spill] sm:$0xff] %v2499_v53  ;;  %3170 = vst [vmem:[#allocation29_spill] sm:$0xff] %v2504_v54  ;;  %v2514_v57 = vld [vmem:[%s2447_s13 + $0x38] sm:$0xff]  ;;  %v2517_v58 = vld [vmem:[%s2447_s13 + $0x10] sm:$0xff]  ;;  %v332_v62 = vadd.f32 %v331_v55, %v2492_v52 }
  0x2a   : > { %1722 = vmatprep.subr.mxu1 %v2432_v41  ;;  %1688 = vmatpush3.msra.mxu0 %v2437_v42  ;;  %3171 = vst [vmem:[#allocation30_spill] sm:$0xff] %v2509_v56  ;;  %3172 = vst [vmem:[#allocation31_spill] sm:$0xff] %v2514_v57  ;;  %v2520_v59 = vld [vmem:[%s2447_s13 + $0x20] sm:$0xff]  ;;  %v2527_v60 = vld [vmem:[%s3061_s2 + $0x90] sm:$0xff]  ;;  %v322_v63 = vadd.f32 %v2517_v58, %v2509_v56 }
  0x2b   : > { %1723 = vmatpush3.msra.mxu1 %v2442_v43  ;;  %1689 = vmatprep.subr.mxu0 %v2454_v44  ;;  %3173 = vst [vmem:[#allocation32_spill] sm:$0xff] %v2517_v58  ;;  %3174 = vst [vmem:[#allocation33_spill] sm:$0xff] %v2520_v59  ;;  %v2532_v61 = vld [vmem:[%s3062_s3 + $0x90] sm:$0xff]  ;;  %v2557_v55 = vld [vmem:[%s3061_s2 + $0x88] sm:$0xff]  ;;  %v333_v58 = vadd.f32 %v332_v62, %v2514_v57 }
  0x2c   : > { %1724 = vmatprep.subr.mxu1 %v2459_v45  ;;  %1690 = vmatpush3.msra.mxu0 %v2464_v46  ;;  %3175 = vst [vmem:[#allocation34_spill] sm:$0xff] %v2527_v60  ;;  %3176 = vst [vmem:[#allocation35_spill] sm:$0xff] %v2532_v61  ;;  %v2542_v51 = vld [vmem:[%s3061_s2 + $0x10] sm:$0xff]  ;;  %v2562_v52 = vld [vmem:[%s3062_s3 + $0x88] sm:$0xff]  ;;  %v323_v56 = vadd.f32 %v322_v63, %v2520_v59 }
  0x2d   : > { %1725 = vmatpush3.msra.mxu1 %v2471_v47  ;;  %1691 = vmatprep.subr.mxu0 %v2476_v48  ;;  %3177 = vst [vmem:[#allocation36_spill] sm:$0xff] %v2542_v51  ;;  %v2547_v50 = vld [vmem:[%s3062_s3 + $0x10] sm:$0xff]  ;;  %3180 = vst [vmem:[#allocation39_spill] sm:$0xff] %v2557_v55  ;;  %v2583_v62 = vld [vmem:[%s3061_s2 + $0x80] sm:$0xff]  ;;  %v334_v57 = vrot.slane %v333_v58, 4 }
  0x2e   : > { %1726 = vmatprep.subr.mxu1 %v2481_v49  ;;  %3178 = vst [vmem:[#allocation37_spill] sm:$0xff] %v2547_v50  ;;  %v2550_v47 = vld [vmem:[%s2447_s13 + $0x30] sm:$0xff]  ;;  %1692 = vmatpush3.msra.mxu0 %v2499_v53  ;;  %3181 = vst [vmem:[#allocation40_spill] sm:$0xff] %v2562_v52  ;;  %v2576_v53 = vld [vmem:[%s3062_s3 + $0x8] sm:$0xff]  ;;  %s2027_s13 = scalar_lea.vmem %s3011_s9, 1024 }
  0x2f   : > { %3179 = vst [vmem:[#allocation38_spill] sm:$0xff] %v2550_v47  ;;  %1727 = vmatpush3.msra.mxu1 %v2504_v54  ;;  %1693 = vmatprep.subr.mxu0 %v2527_v60  ;;  %v2571_v54 = vld [vmem:[%s3061_s2 + $0x8] sm:$0xff]  ;;  %3183 = vst [vmem:[#allocation42_spill] sm:$0xff] %v2576_v53  ;;  %v2588_v63 = vld [vmem:[%s3062_s3 + $0x80] sm:$0xff]  ;;  %v324_v59 = vadd.f32 %v323_v56, %v2550_v47  ;;  %p2028_p11 = scmp.ne.s32.totalorder %s3011_s9, %s2027_s13  ;;  %p2035_p1 = scmp.lt.s32.totalorder %s2033_s15, %s2027_s13 }
  0x30   : > { %1728 = vmatprep.subr.mxu1 %v2532_v61  ;;  %3182 = vst [vmem:[#allocation41_spill] sm:$0xff] %v2571_v54  ;;  %1694 = vmatpush3.msra.mxu0 %v2542_v51  ;;  %3184 = vst [vmem:[#allocation43_spill] sm:$0xff] %v2583_v62  ;;  %v2601_v51 = vld [vmem:[%s3062_s3] sm:$0xff]  ;;  %v335_v61 = vadd.f32 %v334_v57, %v333_v58  ;;  %v2090_v57 = vmov 0  }
  0x31   : > { %1729 = vmatpush3.msra.mxu1 %v2547_v50  ;;  %3185 = vst [vmem:[#allocation44_spill] sm:$0xff] %v2588_v63  ;;  %1695 = vmatprep.subr.mxu0 %v2557_v55  ;;  %v2596_v50 = vld [vmem:[%s3061_s2] sm:$0xff]  ;;  %3187 = vst [vmem:[#allocation46_spill] sm:$0xff] %v2601_v51  ;;  %v325_v56 = vrot.slane %v324_v59, 4  ;;  %p2029_p12 = pnand %p2028_p11, %p2171_p5  ;;  %p2036_p2 = por %p2035_p1, %p2034_p0 }
  0x32   : > { %1730 = vmatprep.subr.mxu1 %v2562_v52  ;;  %3186 = vst [vmem:[#allocation45_spill] sm:$0xff] %v2596_v50  ;;  %1696 = vmatpush3.msra.mxu0 %v2571_v54  ;;  %v2610_v47 = vld [vmem:[%s3060_s1] sm:$0x1]  ;;  %v336_v52 = vrot.slane %v335_v61, 2  ;;  %v2089_v54 = vmov 2  }
  0x33   : > { %1731 = vmatpush3.msra.mxu1 %v2576_v53  ;;  %1697 = vmatprep.subr.mxu0 %v2583_v62  ;;  %3188 = vst [vmem:[#allocation47_spill] sm:$0xff] %v2610_v47  ;;  %v326_v55 = vadd.f32 %v325_v56, %v324_v59  ;;  %p2030_p13 = pneg %p2029_p12 }
  0x34   : > { %1732 = vmatprep.subr.mxu1 %v2588_v63  ;;  %1698 = vmatpush3.msra.mxu0 %v2596_v50  ;;  %v337_v58 = vadd.f32 %v336_v52, %v335_v61  ;;  %v3191_v52 = vld [vmem:[#allocation29_spill] sm:$0xff]  ;;  %v3192_v61 = vld [vmem:[#allocation35_spill] sm:$0xff] }
  0x35   : > { %1733 = vmatpush3.msra.mxu1 %v2601_v51  ;;  %2012 = vset.pattern.permute.xlu1 %v2089_v54  ;;  %v327_v62 = vrot.slane %v326_v55, 2  ;;  %p2037_p3 = pnand %p2036_p2, %p2030_p13 }
  0x36   : > { %2010 = vset.pattern.permute.xlu0 %v2090_v57  ;;  %1085 = vperm.xlu1 %2012, %v2610_v47   ;;  %v338_v50 = vrot.slane %v337_v58, 1  ;;  %v3195_v57 = vld [vmem:[#allocation39_spill] sm:$0xff] }
  0x37   : > { %1066 = vperm.xlu0 %2010, %v2610_v47   ;;  %1737 = vmatprep.subr.msk.mxu0 %vm482_vm0, %v2184_v0  ;;  %v328_v51 = vadd.f32 %v327_v62, %v326_v55  ;;  %v3193_v55 = vld [vmem:[#allocation36_spill] sm:$0xff]  ;;  %v3194_v62 = vld [vmem:[#allocation37_spill] sm:$0xff] }
  0x38   : > { %1771 = vmatprep.subr.msk.mxu1 %vm482_vm0, %v2189_v1  ;;  %v339_v59 = vadd.f32 %v338_v50, %v337_v58  ;;  %v3189_v50 = vld [vmem:[#allocation22_spill] sm:$0xff]  ;;  %v3196_v58 = vld [vmem:[#allocation40_spill] sm:$0xff] }
  0x39   : > { %v329_v56 = vrot.slane %v328_v51, 1  ;;  %v3200_v47 = vld [vmem:[#allocation46_spill] sm:$0xff] }
  0x3a   : > { %404 = vmatprep.mubr.f32.mxu0 %v339_v59  ;;  %475 = vmatprep.mubr.f32.mxu1 %v339_v59  ;;  %v3197_v59 = vld [vmem:[#allocation41_spill] sm:$0xff] }
  0x3b   : > { %v330_v54 = vadd.f32 %v329_v56, %v328_v51  ;;  %v3190_v51 = vld [vmem:[#allocation28_spill] sm:$0xff]  ;;  %v3198_v56 = vld [vmem:[#allocation43_spill] sm:$0xff] }
  0x3d   : > { %405 = vmatmul.mubr.f32.vlgmr.msra.gmra.mxu0 %v330_v54  ;;  %476 = vmatmul.mubr.f32.vlgmr.msra.gmra.mxu1 %v330_v54  ;;  %v3199_v54 = vld [vmem:[#allocation45_spill] sm:$0xff] }
  0x3e   : > { %1738 = vmatpush3.xpose.msk.msra.mxu0 %vm482_vm0, %v2194_v2  ;;  %1772 = vmatpush3.xpose.msk.msra.mxu1 %vm482_vm0, %v2201_v3 }
  0x3f   : > { %1739 = vmatprep.subr.msk.mxu0 %vm482_vm0, %v2206_v4  ;;  %1773 = vmatprep.subr.msk.mxu1 %vm482_vm0, %v2211_v5 }
  0x42   : > { %1740 = vmatpush3.xpose.msk.msra.mxu0 %vm482_vm0, %v2218_v6  ;;  %1774 = vmatpush3.xpose.msk.msra.mxu1 %vm482_vm0, %v2223_v7 }
  0x43   : > { %1741 = vmatprep.subr.msk.mxu0 %vm482_vm0, %v2228_v8  ;;  %1775 = vmatprep.subr.msk.mxu1 %vm482_vm0, %v2235_v9 }
  0x46   : > { %1742 = vmatpush3.xpose.msk.msra.mxu0 %vm482_vm0, %v2240_v10  ;;  %1776 = vmatpush3.xpose.msk.msra.mxu1 %vm482_vm0, %v2245_v11 }
  0x47   : > { %1743 = vmatprep.subr.msk.mxu0 %vm482_vm0, %v2252_v12  ;;  %1777 = vmatprep.subr.msk.mxu1 %vm482_vm0, %v2257_v13 }
  0x4a   : > { %1744 = vmatpush3.xpose.msk.msra.mxu0 %vm482_vm0, %v2264_v14  ;;  %1778 = vmatpush3.xpose.msk.msra.mxu1 %vm482_vm0, %v2269_v15 }
  0x4b   : > { %1745 = vmatprep.subr.msk.mxu0 %vm482_vm0, %v2276_v16  ;;  %1779 = vmatprep.subr.msk.mxu1 %vm482_vm0, %v2281_v17 }
  0x4e   : > { %1746 = vmatpush3.xpose.msk.msra.mxu0 %vm482_vm0, %v2288_v18  ;;  %1780 = vmatpush3.xpose.msk.msra.mxu1 %vm482_vm0, %v2293_v19 }
  0x4f   : > { %1747 = vmatprep.subr.msk.mxu0 %vm482_vm0, %v2301_v20  ;;  %1781 = vmatprep.subr.msk.mxu1 %vm482_vm0, %v2306_v21 }
  0x52   : > { %1748 = vmatpush3.xpose.msk.msra.mxu0 %vm482_vm0, %v2313_v22  ;;  %1782 = vmatpush3.xpose.msk.msra.mxu1 %vm482_vm0, %v2318_v23 }
  0x53   : > { %1749 = vmatprep.subr.msk.mxu0 %vm482_vm0, %v2325_v24  ;;  %1783 = vmatprep.subr.msk.mxu1 %vm482_vm0, %v2330_v25 }
  0x56   : > { %1750 = vmatpush3.xpose.msk.msra.mxu0 %vm482_vm0, %v2337_v26  ;;  %1784 = vmatpush3.xpose.msk.msra.mxu1 %vm482_vm0, %v2342_v27 }
  0x57   : > { %1751 = vmatprep.subr.msk.mxu0 %vm482_vm0, %v2354_v28  ;;  %1785 = vmatprep.subr.msk.mxu1 %vm482_vm0, %v2359_v29 }
  0x5a   : > { %1752 = vmatpush3.xpose.msk.msra.mxu0 %vm482_vm0, %v2366_v30  ;;  %1786 = vmatpush3.xpose.msk.msra.mxu1 %vm482_vm0, %v2371_v31 }
  0x5b   : > { %1753 = vmatprep.subr.msk.mxu0 %vm482_vm0, %v2378_v32  ;;  %1787 = vmatprep.subr.msk.mxu1 %vm482_vm0, %v2383_v33 }
  0x5e   : > { %1754 = vmatpush3.xpose.msk.msra.mxu0 %vm482_vm0, %v2390_v34  ;;  %1788 = vmatpush3.xpose.msk.msra.mxu1 %vm482_vm0, %v2395_v35 }
  0x5f   : > { %1755 = vmatprep.subr.msk.mxu0 %vm482_vm0, %v2403_v36  ;;  %1789 = vmatprep.subr.msk.mxu1 %vm482_vm0, %v2408_v37 }
  0x62   : > { %1756 = vmatpush3.xpose.msk.msra.mxu0 %vm482_vm0, %v2415_v38  ;;  %1790 = vmatpush3.xpose.msk.msra.mxu1 %vm482_vm0, %v2420_v39 }
  0x63   : > { %1757 = vmatprep.subr.msk.mxu0 %vm482_vm0, %v2425_v40  ;;  %1791 = vmatprep.subr.msk.mxu1 %vm482_vm0, %v2432_v41 }
  0x66   : > { %1758 = vmatpush3.xpose.msk.msra.mxu0 %vm482_vm0, %v2437_v42  ;;  %1792 = vmatpush3.xpose.msk.msra.mxu1 %vm482_vm0, %v2442_v43 }
  0x67   : > { %1759 = vmatprep.subr.msk.mxu0 %vm482_vm0, %v2454_v44  ;;  %1793 = vmatprep.subr.msk.mxu1 %vm482_vm0, %v2459_v45 }
  0x6a   : > { %1760 = vmatpush3.xpose.msk.msra.mxu0 %vm482_vm0, %v2464_v46  ;;  %1794 = vmatpush3.xpose.msk.msra.mxu1 %vm482_vm0, %v3189_v50 }
  0x6b   : > { %1761 = vmatprep.subr.msk.mxu0 %vm482_vm0, %v2476_v48  ;;  %1795 = vmatprep.subr.msk.mxu1 %vm482_vm0, %v2481_v49 }
  0x6e   : > { %1762 = vmatpush3.xpose.msk.msra.mxu0 %vm482_vm0, %v3190_v51  ;;  %1796 = vmatpush3.xpose.msk.msra.mxu1 %vm482_vm0, %v3191_v52 }
  0x6f   : > { %1763 = vmatprep.subr.msk.mxu0 %vm482_vm0, %v2527_v60  ;;  %1797 = vmatprep.subr.msk.mxu1 %vm482_vm0, %v3192_v61 }
  0x72   : > { %1764 = vmatpush3.xpose.msk.msra.mxu0 %vm482_vm0, %v3193_v55  ;;  %1798 = vmatpush3.xpose.msk.msra.mxu1 %vm482_vm0, %v3194_v62 }
  0x73   : > { %1765 = vmatprep.subr.msk.mxu0 %vm482_vm0, %v3195_v57  ;;  %1799 = vmatprep.subr.msk.mxu1 %vm482_vm0, %v3196_v58 }
  0x76   : > { %1766 = vmatpush3.xpose.msk.msra.mxu0 %vm482_vm0, %v3197_v59  ;;  %1800 = vmatpush3.xpose.msk.msra.mxu1 %vm482_vm0, %v2576_v53 }
  0x77   : > { %1767 = vmatprep.subr.msk.mxu0 %vm482_vm0, %v3198_v56  ;;  %1801 = vmatprep.subr.msk.mxu1 %vm482_vm0, %v2588_v63 }
  0x7a   : > { %1768 = vmatpush3.xpose.msk.msra.mxu0 %vm482_vm0, %v3199_v54  ;;  %1802 = vmatpush3.xpose.msk.msra.mxu1 %vm482_vm0, %v3200_v47 }
  0x7b   : > { %1805 = vmatprep.subr.mxu0 %v2184_v0  ;;  %1840 = vmatprep.subr.mxu1 %v2189_v1 }
  0xfd   : > { %v1699_v59 = vpop.f32.mrf.mxu0  ;;  %v1734_v58 = vpop.f32.mrf.mxu1 }
  0xff   : > { %v1700_v57 = vpop.f32.mrf.mxu0  ;;  %v1735_v53 = vpop.f32.mrf.mxu1 }
 0x100   : > { %v1701_v62 = vadd.f32 %v1700_v57, %v1699_v59  ;;  %v1736_v55 = vadd.f32 %v1735_v53, %v1734_v58  ;;  %v3201_v53 = vld [vmem:[#allocation35_spill] sm:$0xff]  ;;  %v3205_v58 = vld [vmem:[#allocation40_spill] sm:$0xff]  ;;  %v3206_v59 = vld [vmem:[#allocation41_spill] sm:$0xff] }
 0x101   : > { %v3204_v57 = vld [vmem:[#allocation39_spill] sm:$0xff] }
 0x102   : > { %v2746_v56 = vmul.f32 0.001953125, %v1701_v62  ;;  %v2748_v61 = vmul.f32 0.001953125, %v1736_v55  ;;  %v3202_v55 = vld [vmem:[#allocation36_spill] sm:$0xff]  ;;  %v3203_v62 = vld [vmem:[#allocation37_spill] sm:$0xff] }
 0x104   : > { %1769 = vmatprep.mubr.msk.f32.mxu0 %vm482_vm0, %v2746_v56  ;;  %1803 = vmatprep.mubr.msk.f32.mxu1 %vm482_vm0, %v2748_v61 }
 0x105   : > { %1770 = vmatmul.mubr.msk.f32.vlgmr.msra.gmra.mxu0 %vm482_vm0, %v2746_v56  ;;  %1804 = vmatmul.mubr.msk.f32.vlgmr.msra.gmra.mxu1 %vm482_vm0, %v2748_v61 }
 0x106   : > { %1806 = vmatpush3.msra.mxu0 %v2194_v2  ;;  %1841 = vmatpush3.msra.mxu1 %v2201_v3 }
 0x107   : > { %1807 = vmatprep.subr.mxu0 %v2206_v4  ;;  %1842 = vmatprep.subr.mxu1 %v2211_v5 }
 0x108   : > { %1808 = vmatpush3.msra.mxu0 %v2218_v6  ;;  %1843 = vmatpush3.msra.mxu1 %v2223_v7 }
 0x109   : > { %1809 = vmatprep.subr.mxu0 %v2228_v8  ;;  %1844 = vmatprep.subr.mxu1 %v2235_v9 }
 0x10a   : > { %1810 = vmatpush3.msra.mxu0 %v2240_v10  ;;  %1845 = vmatpush3.msra.mxu1 %v2245_v11 }
 0x10b   : > { %1811 = vmatprep.subr.mxu0 %v2252_v12  ;;  %1846 = vmatprep.subr.mxu1 %v2257_v13 }
 0x10c   : > { %1812 = vmatpush3.msra.mxu0 %v2264_v14  ;;  %1847 = vmatpush3.msra.mxu1 %v2269_v15 }
 0x10d   : > { %1813 = vmatprep.subr.mxu0 %v2276_v16  ;;  %1848 = vmatprep.subr.mxu1 %v2281_v17 }
 0x10e   : > { %1814 = vmatpush3.msra.mxu0 %v2288_v18  ;;  %1849 = vmatpush3.msra.mxu1 %v2293_v19 }
 0x10f   : > { %1815 = vmatprep.subr.mxu0 %v2301_v20  ;;  %1850 = vmatprep.subr.mxu1 %v2306_v21 }
 0x110   : > { %1816 = vmatpush3.msra.mxu0 %v2313_v22  ;;  %1851 = vmatpush3.msra.mxu1 %v2318_v23 }
 0x111   : > { %1817 = vmatprep.subr.mxu0 %v2325_v24  ;;  %1852 = vmatprep.subr.mxu1 %v2330_v25 }
 0x112   : > { %1818 = vmatpush3.msra.mxu0 %v2337_v26  ;;  %1853 = vmatpush3.msra.mxu1 %v2342_v27 }
 0x113   : > { %1819 = vmatprep.subr.mxu0 %v2354_v28  ;;  %1854 = vmatprep.subr.mxu1 %v2359_v29 }
 0x114   : > { %1820 = vmatpush3.msra.mxu0 %v2366_v30  ;;  %1855 = vmatpush3.msra.mxu1 %v2371_v31 }
 0x115   : > { %1821 = vmatprep.subr.mxu0 %v2378_v32  ;;  %1856 = vmatprep.subr.mxu1 %v2383_v33  ;;  %v3216_v32 = vld [vmem:[#allocation27_spill] sm:$0xff] }
 0x116   : > { %1822 = vmatpush3.msra.mxu0 %v2390_v34  ;;  %1857 = vmatpush3.msra.mxu1 %v2395_v35 }
 0x117   : > { %1823 = vmatprep.subr.mxu0 %v2403_v36  ;;  %1858 = vmatprep.subr.mxu1 %v2408_v37 }
 0x118   : > { %1824 = vmatpush3.msra.mxu0 %v2415_v38  ;;  %1859 = vmatpush3.msra.mxu1 %v2420_v39 }
 0x119   : > { %1825 = vmatprep.subr.mxu0 %v2425_v40  ;;  %1860 = vmatprep.subr.mxu1 %v2432_v41 }
 0x11a   : > { %1826 = vmatpush3.msra.mxu0 %v2437_v42  ;;  %1861 = vmatpush3.msra.mxu1 %v2442_v43 }
 0x11b   : > { %1827 = vmatprep.subr.mxu0 %v2454_v44  ;;  %1862 = vmatprep.subr.mxu1 %v2459_v45 }
 0x11c   : > { %1828 = vmatpush3.msra.mxu0 %v2464_v46  ;;  %1863 = vmatpush3.msra.mxu1 %v3189_v50  ;;  %v3208_v46 = vld [vmem:[#allocation43_spill] sm:$0xff]  ;;  %v3213_v50 = vld [vmem:[#allocation38_spill] sm:$0xff] }
 0x11d   : > { %1829 = vmatprep.subr.mxu0 %v2476_v48  ;;  %1864 = vmatprep.subr.mxu1 %v2481_v49  ;;  %v3207_v48 = vld [vmem:[#allocation42_spill] sm:$0xff] }
 0x11e   : > { %1830 = vmatpush3.msra.mxu0 %v3190_v51  ;;  %1865 = vmatpush3.msra.mxu1 %v3191_v52 }
 0x11f   : > { %1831 = vmatprep.subr.mxu0 %v2527_v60  ;;  %1866 = vmatprep.subr.mxu1 %v3201_v53  ;;  %v2091_v60 = vmov 3   ;;  %v3211_v53 = vld [vmem:[#allocation32_spill] sm:$0xff] }
 0x120   : > { %1832 = vmatpush3.msra.mxu0 %v3202_v55  ;;  %1867 = vmatpush3.msra.mxu1 %v3203_v62  ;;  %v2092_v55 = vmov 1   ;;  %v3209_v62 = vld [vmem:[#allocation47_spill] sm:$0xff] }
 0x121   : > { %1833 = vmatprep.subr.mxu0 %v3204_v57  ;;  %1868 = vmatprep.subr.mxu1 %v3205_v58 }
 0x122   : > { %1834 = vmatpush3.msra.mxu0 %v3206_v59  ;;  %1869 = vmatpush3.msra.mxu1 %v3207_v48  ;;  %v823_v59 = vlaneseq }
 0x123   : > { %1835 = vmatprep.subr.mxu0 %v3208_v46  ;;  %1870 = vmatprep.subr.mxu1 %v2588_v63 }
 0x124   : > { %1836 = vmatpush3.msra.mxu0 %v3199_v54  ;;  %1871 = vmatpush3.msra.mxu1 %v3200_v47  ;;  %v824_v57 = vshrl.u32 %v823_v59, 7  ;;  %v3210_v47 = vld [vmem:[#allocation30_spill] sm:$0xff] }
 0x125   : > { %2013 = vset.pattern.permute.xlu1 %v2091_v60  ;;  %2011 = vset.pattern.permute.xlu0 %v2092_v55  ;;  %v3212_v55 = vld [vmem:[#allocation33_spill] sm:$0xff] }
 0x126   : > { %1094 = vperm.xlu1 %2013, %v3209_v62   ;;  %1075 = vperm.xlu0 %2011, %v3209_v62   ;;  %v2822_v48 = vsub.s32 0, %v824_v57 }
 0x12a   : > { %2014 = vset.pattern.permute.xlu0 %v2091_v60 }
 0x1c5   : > { %v648_v46 = vpop.f32.mrf.mxu0  ;;  %v818_v58 = vpop.f32.mrf.mxu1 }
 0x1c6   : > { %v826_v63 = vrot.slane %v648_v46, %v2822_v48  ;;  %v842_v54 = vrot.slane %v818_v58, %v2822_v48 }
 0x1c7   : > { %v650_v42 = vpop.f32.mrf.mxu0  ;;  %v820_v46 = vpop.f32.mrf.mxu1 }
 0x1c8   : > { %v831_v51 = vsub.f32 %v3210_v47, %v826_v63  ;;  %v833_v52 = vsub.f32 %v3211_v53, %v826_v63  ;;  %v835_v49 = vsub.f32 %v3212_v55, %v826_v63  ;;  %v837_v44 = vsub.f32 %v3213_v50, %v826_v63 }
 0x1c9   : > { %v847_v60 = vsub.f32 %v3210_v47, %v842_v54  ;;  %v849_v62 = vsub.f32 %v3211_v53, %v842_v54  ;;  %v851_v57 = vsub.f32 %v3212_v55, %v842_v54  ;;  %v853_v59 = vsub.f32 %v3213_v50, %v842_v54  ;;  %v3214_v55 = vld [vmem:[#allocation25_spill] sm:$0xff]  ;;  %v3215_v54 = vld [vmem:[#allocation26_spill] sm:$0xff] }
 0x1ca   : > { %v855_v45 = vmul.f32 %v831_v51, %v831_v51  ;;  %v857_v58 = vmul.f32 %v833_v52, %v833_v52  ;;  %v859_v38 = vmul.f32 %v835_v49, %v835_v49  ;;  %v830_v39 = vrot.slane %v650_v42, %v2822_v48 }
 0x1cb   : > { %v951_v43 = vmul.f32 %v847_v60, %v847_v60  ;;  %v953_v40 = vmul.f32 %v849_v62, %v849_v62  ;;  %v846_v63 = vrot.slane %v820_v46, %v2822_v48  ;;  %v861_v36 = vmul.f32 %v837_v44, %v837_v44  ;;  %v3217_v60 = vld [vmem:[#allocation31_spill] sm:$0xff] }
 0x1cc   : > { %v863_v41 = vadd.f32 %v857_v58, %v855_v45  ;;  %v955_v47 = vmul.f32 %v851_v57, %v851_v57  ;;  %v957_v34 = vmul.f32 %v853_v59, %v853_v59  ;;  %v832_v35 = vsub.f32 %v3214_v55, %v830_v39 }
 0x1cd   : > { %v959_v53 = vadd.f32 %v953_v40, %v951_v43  ;;  %v834_v50 = vsub.f32 %v3215_v54, %v830_v39  ;;  %v836_v51 = vsub.f32 %v3216_v32, %v830_v39  ;;  %v838_v62 = vsub.f32 %v3217_v60, %v830_v39 }
 0x1ce   : > { %v864_v37 = vadd.f32 %v863_v41, %v859_v38  ;;  %v848_v45 = vsub.f32 %v3214_v55, %v846_v63  ;;  %v850_v42 = vsub.f32 %v3215_v54, %v846_v63  ;;  %v856_v46 = vmul.f32 %v832_v35, %v832_v35 }
 0x1cf   : > { %v960_v52 = vadd.f32 %v959_v53, %v955_v47  ;;  %v858_v44 = vmul.f32 %v834_v50, %v834_v50  ;;  %v860_v59 = vmul.f32 %v836_v51, %v836_v51  ;;  %v852_v38 = vsub.f32 %v3216_v32, %v846_v63 }
 0x1d0   : > { %v865_v49 = vadd.f32 %v864_v37, %v861_v36  ;;  %v854_v40 = vsub.f32 %v3217_v60, %v846_v63  ;;  %v952_v58 = vmul.f32 %v848_v45, %v848_v45  ;;  %v954_v30 = vmul.f32 %v850_v42, %v850_v42 }
 0x1d1   : > { %v961_v57 = vadd.f32 %v960_v52, %v957_v34  ;;  %v872_v43 = vadd.f32 %v858_v44, %v856_v46  ;;  %v862_v53 = vmul.f32 %v838_v62, %v838_v62  ;;  %v956_v33 = vmul.f32 %v852_v38, %v852_v38 }
 0x1d2   : > { %v866_v41 = vrot.slane %v865_v49, 4  ;;  %v968_v55 = vadd.f32 %v954_v30, %v952_v58  ;;  %v958_v36 = vmul.f32 %v854_v40, %v854_v40 }
 0x1d3   : > { %v962_v47 = vrot.slane %v961_v57, 4  ;;  %v873_v39 = vadd.f32 %v872_v43, %v860_v59  ;;  %v2093_v43 = vmov 0.0  }
 0x1d4   : > { %v867_v31 = vadd.f32 %v866_v41, %v865_v49  ;;  %v969_v35 = vadd.f32 %v968_v55, %v956_v33  ;;  %1949 = vmatprep.subr.mxu0 %v2093_v43  ;;  %1956 = vmatprep.subr.mxu1 %v2093_v43 }
 0x1d5   : > { %v963_v54 = vadd.f32 %v962_v47, %v961_v57  ;;  %v874_v37 = vadd.f32 %v873_v39, %v862_v53 }
 0x1d6   : > { %v868_v34 = vrot.slane %v867_v31, 2  ;;  %v970_v51 = vadd.f32 %v969_v35, %v958_v36 }
 0x1d7   : > { %v875_v50 = vrot.slane %v874_v37, 4  ;;  %v964_v52 = vrot.slane %v963_v54, 2 }
 0x1d8   : > { %v971_v63 = vrot.slane %v970_v51, 4  ;;  %v869_v60 = vadd.f32 %v868_v34, %v867_v31  ;;  %v1104_v31 = vld [vmem:[%s3063_s4 + $0x8] sm:$0xff] }
 0x1d9   : > { %v876_v32 = vadd.f32 %v875_v50, %v874_v37  ;;  %v965_v42 = vadd.f32 %v964_v52, %v963_v54  ;;  %v1103_v54 = vld [vmem:[%s3063_s4] sm:$0xff]  ;;  %v1067_v50 = vpop.permute.xlu0 %1066 }
 0x1da   : > { %v972_v45 = vadd.f32 %v971_v63, %v970_v51  ;;  %v870_v59 = vrot.slane %v869_v60, 1  ;;  %v1086_v51 = vpop.permute.xlu1 %1085 }
 0x1db   : > { %v877_v46 = vrot.slane %v876_v32, 2  ;;  %v966_v49 = vrot.slane %v965_v42, 1 }
 0x1dc   : > { %v973_v62 = vrot.slane %v972_v45, 2  ;;  %v871_v33 = vadd.f32 %v870_v59, %v869_v60  ;;  %v1184_v60 = vld [vmem:[%s3064_s5] sm:$0xff] }
 0x1dd   : > { %v878_v44 = vadd.f32 %v877_v46, %v876_v32  ;;  %v967_v41 = vadd.f32 %v966_v49, %v965_v42  ;;  %v1185_v32 = vld [vmem:[%s3064_s5 + $0x8] sm:$0xff]  ;;  %v1076_v52 = vpop.permute.xlu0 %1075 }
 0x1de   : > { %v974_v30 = vadd.f32 %v973_v62, %v972_v45  ;;  %v1095_v46 = vpop.permute.xlu1 %1094 }
 0x1df   : > { %v879_v38 = vrot.slane %v878_v44, 1 }
 0x1e0   : > { %v975_v40 = vrot.slane %v974_v30, 1 }
 0x1e1   : > { %v880_v57 = vadd.f32 %v879_v38, %v878_v44  ;;  %v1091_v44 = vrot.slane %v1086_v51, %v2822_v48  ;;  %v1100_v38 = vrot.slane %v1095_v46, %v2822_v48 }
 0x1e2   : > { %v976_v55 = vadd.f32 %v975_v40, %v974_v30 }
 0x1e3   : > { %945 = vmatprep.mubr.f32.mxu0 %v880_v57 }
 0x1e4   : > { %946 = vmatmul.mubr.f32.vlgmr.msra.gmra.mxu0 %v871_v33  ;;  %1041 = vmatprep.mubr.f32.mxu1 %v976_v55 }
 0x1e5   : > { %1042 = vmatmul.mubr.f32.vlgmr.msra.gmra.mxu1 %v967_v41  ;;  %1950 = vmatpush3.msra.mxu0 %v1104_v31 }
 0x1e6   : > { %1957 = vmatpush3.msra.mxu1 %v1185_v32  ;;  %1951 = vmatprep.subr.mxu0 %v2093_v43 }
 0x1e7   : > { %1958 = vmatprep.subr.mxu1 %v2093_v43  ;;  %1952 = vmatpush3.msra.mxu0 %v1103_v54 }
 0x1e8   : > { %1959 = vmatpush3.msra.mxu1 %v1184_v60  ;;  %1953 = vmatprep.mubr.msk.f32.mxu0 %vm2094_vm1, %v2093_v43  ;;  %v3248_v60 = vld [vmem:[#allocation41_spill] sm:$0xff] }
 0x1e9   : > { %1960 = vmatprep.mubr.msk.f32.mxu1 %vm2094_vm1, %v2093_v43  ;;  %1881 = vmatprep.subr.msk.mxu0 %vm482_vm0, %v2189_v1  ;;  %v1072_v1 = vrot.slane %v1067_v50, %v2822_v48  ;;  %v1092_v43 = vmul.f32 %v1091_v44, %v2748_v61  ;;  %v3246_v61 = vld [vmem:[#allocation42_spill] sm:$0xff] }
 0x1ea   : > { %1915 = vmatprep.subr.msk.mxu1 %vm482_vm0, %v2184_v0  ;;  %v1081_v0 = vrot.slane %v1076_v52, %v2822_v48 }
 0x1eb   : > { %v1073_v40 = vmul.f32 %v1072_v1, %v2746_v56  ;;  %v3247_v56 = vld [vmem:[#allocation44_spill] sm:$0xff] }
 0x2a4   : > { %v1837_v58 = vpop.f32.mrf.mxu0 }
 0x2a5   : > { %v1872_v47 = vpop.f32.mrf.mxu1 }
 0x2a6   : > { %v1838_v53 = vpop.f32.mrf.mxu0 }
 0x2a7   : > { %v1839_v39 = vadd.f32 %v1838_v53, %v1837_v58  ;;  %v1873_v36 = vpop.f32.mrf.mxu1  ;;  %v3249_v58 = vld [vmem:[#allocation43_spill] sm:$0xff]  ;;  %v3251_v53 = vld [vmem:[#allocation45_spill] sm:$0xff] }
 0x2a8   : > { %v1874_v37 = vadd.f32 %v1873_v36, %v1872_v47  ;;  %v3250_v47 = vld [vmem:[#allocation46_spill] sm:$0xff] }
 0x2a9   : > { %v1047_v35 = vmul.f32 0.0019569471, %v1839_v39 }
 0x2aa   : > { %v1055_v34 = vmul.f32 0.0019569471, %v1874_v37 }
 0x2ab   : > { %2015 = vrsqrt.f32 %v1047_v35  ;;  %vm1050_vm2 = vcmp.eq.f32.partialorder %v1047_v35, inf  ;;  %v1053_v62 = vand.u32 2147483648, %v1047_v35  ;;  %vm1052_vm3 = vcmp.eq.f32.partialorder %v1047_v35, 0.0 }
 0x2ac   : > { %2017 = vrsqrt.f32 %v1055_v34  ;;  %vm1058_vm4 = vcmp.eq.f32.partialorder %v1055_v34, inf  ;;  %v1061_v49 = vand.u32 2147483648, %v1055_v34  ;;  %vm1060_vm5 = vcmp.eq.f32.partialorder %v1055_v34, 0.0 }
 0x2b8   : > { %v2016_v63 = vpop.eup %2015 }
 0x2b9   : > { %v1049_v45 = vmul.f32 %v2016_v63, %v1047_v35  ;;  %v2018_v42 = vpop.eup %2017 }
 0x2ba   : > { %v1057_v59 = vmul.f32 %v2018_v42, %v1055_v34 }
 0x2bb   : > { %v1051_v30 = vsel %vm1050_vm2, %v1047_v35, %v1049_v45 }
 0x2bc   : > { %v1054_v57 = vsel %vm1052_vm3, %v1053_v62, %v1051_v30  ;;  %v1059_v33 = vsel %vm1058_vm4, %v1055_v34, %v1057_v59 }
 0x2bd   : > { %v1082_v55 = vmul.f32 %v1081_v0, %v1054_v57  ;;  %v1062_v41 = vsel %vm1060_vm5, %v1061_v49, %v1059_v33 }
 0x2be   : > { %v1101_v31 = vmul.f32 %v1100_v38, %v1062_v41 }
 0x2bf   : > { %v1083_v32 = vadd.f32 %v1082_v55, %v1073_v40  ;;  %v3252_v55 = vld [vmem:[#allocation30_spill] sm:$0xff] }
 0x2c0   : > { %v1102_v54 = vadd.f32 %v1101_v31, %v1092_v43  ;;  %v3253_v43 = vld [vmem:[#allocation32_spill] sm:$0xff] }
 0x2c1   : > { %1954 = vmatmul.mubr.msk.f32.vlgmr.msra.gmra.mxu0 %vm482_vm0, %v1083_v32  ;;  %v3254_v32 = vld [vmem:[#allocation33_spill] sm:$0xff] }
 0x2c2   : > { %1882 = vmatpush3.xpose.msk.msra.mxu0 %vm482_vm0, %v2201_v3  ;;  %1961 = vmatmul.mubr.msk.f32.vlgmr.msra.gmra.mxu1 %vm482_vm0, %v1102_v54  ;;  %v3219_v3 = vld [vmem:[#allocation8_spill] sm:$0xff] }
 0x2c3   : > { %1883 = vmatprep.subr.msk.mxu0 %vm482_vm0, %v2211_v5  ;;  %1916 = vmatpush3.xpose.msk.msra.mxu1 %vm482_vm0, %v2194_v2  ;;  %v3218_v2 = vld [vmem:[#allocation6_spill] sm:$0xff]  ;;  %v3221_v5 = vld [vmem:[#allocation7_spill] sm:$0xff] }
 0x2c4   : > { %1917 = vmatprep.subr.msk.mxu1 %vm482_vm0, %v2206_v4  ;;  %v3220_v4 = vld [vmem:[#allocation5_spill] sm:$0xff] }
 0x2c6   : > { %1884 = vmatpush3.xpose.msk.msra.mxu0 %vm482_vm0, %v2223_v7  ;;  %v3223_v7 = vld [vmem:[#allocation12_spill] sm:$0xff] }
 0x2c7   : > { %1885 = vmatprep.subr.msk.mxu0 %vm482_vm0, %v2235_v9  ;;  %1918 = vmatpush3.xpose.msk.msra.mxu1 %vm482_vm0, %v2218_v6  ;;  %v3222_v6 = vld [vmem:[#allocation10_spill] sm:$0xff]  ;;  %v3225_v9 = vld [vmem:[#allocation11_spill] sm:$0xff] }
 0x2c8   : > { %1919 = vmatprep.subr.msk.mxu1 %vm482_vm0, %v2228_v8  ;;  %v3224_v8 = vld [vmem:[#allocation9_spill] sm:$0xff] }
 0x2ca   : > { %1886 = vmatpush3.xpose.msk.msra.mxu0 %vm482_vm0, %v2245_v11  ;;  %v3227_v11 = vld [vmem:[#allocation16_spill] sm:$0xff] }
 0x2cb   : > { %1887 = vmatprep.subr.msk.mxu0 %vm482_vm0, %v2257_v13  ;;  %1920 = vmatpush3.xpose.msk.msra.mxu1 %vm482_vm0, %v2240_v10  ;;  %v3226_v10 = vld [vmem:[#allocation14_spill] sm:$0xff]  ;;  %v3229_v13 = vld [vmem:[#allocation15_spill] sm:$0xff] }
 0x2cc   : > { %1921 = vmatprep.subr.msk.mxu1 %vm482_vm0, %v2252_v12  ;;  %v3228_v12 = vld [vmem:[#allocation13_spill] sm:$0xff] }
 0x2ce   : > { %1888 = vmatpush3.xpose.msk.msra.mxu0 %vm482_vm0, %v2269_v15  ;;  %v3231_v15 = vld [vmem:[#allocation20_spill] sm:$0xff] }
 0x2cf   : > { %1889 = vmatprep.subr.msk.mxu0 %vm482_vm0, %v2281_v17  ;;  %1922 = vmatpush3.xpose.msk.msra.mxu1 %vm482_vm0, %v2264_v14  ;;  %v3230_v14 = vld [vmem:[#allocation18_spill] sm:$0xff]  ;;  %v3233_v17 = vld [vmem:[#allocation19_spill] sm:$0xff] }
 0x2d0   : > { %1923 = vmatprep.subr.msk.mxu1 %vm482_vm0, %v2276_v16  ;;  %v3232_v16 = vld [vmem:[#allocation17_spill] sm:$0xff] }
 0x2d2   : > { %1890 = vmatpush3.xpose.msk.msra.mxu0 %vm482_vm0, %v2293_v19  ;;  %v3235_v19 = vld [vmem:[#allocation24_spill] sm:$0xff] }
 0x2d3   : > { %1891 = vmatprep.subr.msk.mxu0 %vm482_vm0, %v2306_v21  ;;  %1924 = vmatpush3.xpose.msk.msra.mxu1 %vm482_vm0, %v2288_v18  ;;  %v3234_v18 = vld [vmem:[#allocation22_spill] sm:$0xff]  ;;  %v3237_v21 = vld [vmem:[#allocation23_spill] sm:$0xff] }
 0x2d4   : > { %1925 = vmatprep.subr.msk.mxu1 %vm482_vm0, %v2301_v20  ;;  %v3236_v20 = vld [vmem:[#allocation21_spill] sm:$0xff] }
 0x2d6   : > { %1892 = vmatpush3.xpose.msk.msra.mxu0 %vm482_vm0, %v2318_v23  ;;  %v3239_v23 = vld [vmem:[#allocation35_spill] sm:$0xff] }
 0x2d7   : > { %1893 = vmatprep.subr.msk.mxu0 %vm482_vm0, %v2330_v25  ;;  %1926 = vmatpush3.xpose.msk.msra.mxu1 %vm482_vm0, %v2313_v22  ;;  %v3238_v22 = vld [vmem:[#allocation29_spill] sm:$0xff]  ;;  %v3241_v25 = vld [vmem:[#allocation34_spill] sm:$0xff] }
 0x2d8   : > { %1927 = vmatprep.subr.msk.mxu1 %vm482_vm0, %v2325_v24  ;;  %v3240_v24 = vld [vmem:[#allocation28_spill] sm:$0xff] }
 0x2da   : > { %1894 = vmatpush3.xpose.msk.msra.mxu0 %vm482_vm0, %v2342_v27  ;;  %v3243_v27 = vld [vmem:[#allocation40_spill] sm:$0xff] }
 0x2db   : > { %1895 = vmatprep.subr.msk.mxu0 %vm482_vm0, %v2359_v29  ;;  %1928 = vmatpush3.xpose.msk.msra.mxu1 %vm482_vm0, %v2337_v26  ;;  %v3242_v26 = vld [vmem:[#allocation37_spill] sm:$0xff]  ;;  %v3245_v29 = vld [vmem:[#allocation39_spill] sm:$0xff] }
 0x2dc   : > { %1929 = vmatprep.subr.msk.mxu1 %vm482_vm0, %v2354_v28  ;;  %v3244_v28 = vld [vmem:[#allocation36_spill] sm:$0xff] }
 0x2de   : > { %1896 = vmatpush3.xpose.msk.msra.mxu0 %vm482_vm0, %v3218_v2  ;;  %v3255_v2 = vld [vmem:[#allocation38_spill] sm:$0xff] }
 0x2df   : > { %1897 = vmatprep.subr.msk.mxu0 %vm482_vm0, %v3219_v3  ;;  %1930 = vmatpush3.xpose.msk.msra.mxu1 %vm482_vm0, %v3220_v4 }
 0x2e0   : > { %1931 = vmatprep.subr.msk.mxu1 %vm482_vm0, %v3221_v5  ;;  %v3256_v5 = vld [vmem:[#allocation25_spill] sm:$0xff] }
 0x2e2   : > { %1898 = vmatpush3.xpose.msk.msra.mxu0 %vm482_vm0, %v3222_v6 }
 0x2e3   : > { %1899 = vmatprep.subr.msk.mxu0 %vm482_vm0, %v3223_v7  ;;  %1932 = vmatpush3.xpose.msk.msra.mxu1 %vm482_vm0, %v3224_v8  ;;  %v3257_v7 = vld [vmem:[#allocation26_spill] sm:$0xff] }
 0x2e4   : > { %1933 = vmatprep.subr.msk.mxu1 %vm482_vm0, %v3225_v9  ;;  %v3258_v9 = vld [vmem:[#allocation27_spill] sm:$0xff] }
 0x2e6   : > { %1900 = vmatpush3.xpose.msk.msra.mxu0 %vm482_vm0, %v3226_v10  ;;  %v3259_v10 = vld [vmem:[#allocation31_spill] sm:$0xff] }
 0x2e7   : > { %1901 = vmatprep.subr.msk.mxu0 %vm482_vm0, %v3227_v11  ;;  %1934 = vmatpush3.xpose.msk.msra.mxu1 %vm482_vm0, %v3228_v12 }
 0x2e8   : > { %1935 = vmatprep.subr.msk.mxu1 %vm482_vm0, %v3229_v13 }
 0x2ea   : > { %1902 = vmatpush3.xpose.msk.msra.mxu0 %vm482_vm0, %v3230_v14 }
 0x2eb   : > { %1903 = vmatprep.subr.msk.mxu0 %vm482_vm0, %v3231_v15  ;;  %1936 = vmatpush3.xpose.msk.msra.mxu1 %vm482_vm0, %v3232_v16 }
 0x2ec   : > { %1937 = vmatprep.subr.msk.mxu1 %vm482_vm0, %v3233_v17 }
 0x2ee   : > { %1904 = vmatpush3.xpose.msk.msra.mxu0 %vm482_vm0, %v3234_v18 }
 0x2ef   : > { %1905 = vmatprep.subr.msk.mxu0 %vm482_vm0, %v3235_v19  ;;  %1938 = vmatpush3.xpose.msk.msra.mxu1 %vm482_vm0, %v3236_v20 }
 0x2f0   : > { %1939 = vmatprep.subr.msk.mxu1 %vm482_vm0, %v3237_v21 }
 0x2f2   : > { %1906 = vmatpush3.xpose.msk.msra.mxu0 %vm482_vm0, %v3238_v22 }
 0x2f3   : > { %1907 = vmatprep.subr.msk.mxu0 %vm482_vm0, %v3239_v23  ;;  %1940 = vmatpush3.xpose.msk.msra.mxu1 %vm482_vm0, %v3240_v24 }
 0x2f4   : > { %1941 = vmatprep.subr.msk.mxu1 %vm482_vm0, %v3241_v25 }
 0x2f6   : > { %1908 = vmatpush3.xpose.msk.msra.mxu0 %vm482_vm0, %v3242_v26 }
 0x2f7   : > { %1909 = vmatprep.subr.msk.mxu0 %vm482_vm0, %v3243_v27  ;;  %1942 = vmatpush3.xpose.msk.msra.mxu1 %vm482_vm0, %v3244_v28 }
 0x2f8   : > { %1943 = vmatprep.subr.msk.mxu1 %vm482_vm0, %v3245_v29 }
 0x2fa   : > { %1910 = vmatpush3.xpose.msk.msra.mxu0 %vm482_vm0, %v3246_v61 }
 0x2fb   : > { %1911 = vmatprep.subr.msk.mxu0 %vm482_vm0, %v3247_v56  ;;  %1944 = vmatpush3.xpose.msk.msra.mxu1 %vm482_vm0, %v3248_v60 }
 0x2fc   : > { %1945 = vmatprep.subr.msk.mxu1 %vm482_vm0, %v3249_v58 }
 0x2fe   : > { %1912 = vmatpush3.xpose.msk.msra.mxu0 %vm482_vm0, %v3250_v47 }
 0x2ff   : > { %1946 = vmatpush3.xpose.msk.msra.mxu1 %vm482_vm0, %v3251_v53 }
 0x381   : > { %v1174_v39 = vpop.f32.mrf.mxu0 }
 0x382   : > { %v1591_v36 = vmul.f32 -1.442695, %v1174_v39  ;;  %v1255_v35 = vpop.f32.mrf.mxu1 }
 0x383   : > { %v1955_v37 = vpop.f32.mrf.mxu0  ;;  %v1593_v34 = vmul.f32 -1.442695, %v1255_v35 }
 0x384   : > { %2019 = vpow2.f32 %v1591_v36  ;;  %v1962_v50 = vpop.f32.mrf.mxu1 }
 0x385   : > { %2021 = vpow2.f32 %v1593_v34 }
 0x391   : > { %v2020_v51 = vpop.eup %2019 }
 0x392   : > { %v1181_v52 = vadd.f32 1.0, %v2020_v51  ;;  %v2022_v63 = vpop.eup %2021 }
 0x393   : > { %v1262_v46 = vadd.f32 1.0, %v2022_v63 }
 0x394   : > { %2023 = vrcp.f32 %v1181_v52 }
 0x395   : > { %2025 = vrcp.f32 %v1262_v46 }
 0x3a1   : > { %v2024_v1 = vpop.eup %2023 }
 0x3a2   : > { %1947 = vmatprep.mubr.msk.f32.mxu1 %vm482_vm0, %v2024_v1  ;;  %v2026_v45 = vpop.eup %2025 }
 0x3a3   : > { %1948 = vmatmul.mubr.msk.f32.vlgmr.msra.gmra.mxu1 %vm482_vm0, %v2024_v1  ;;  %1913 = vmatprep.mubr.msk.f32.mxu0 %vm482_vm0, %v2026_v45 }
 0x3a4   : > { %1914 = vmatmul.mubr.msk.f32.vlgmr.msra.gmra.mxu0 %vm482_vm0, %v2026_v45 }
 0x463   : > { %v1408_v0 = vpop.f32.mrf.mxu1 }
 0x464   : > { %v1334_v42 = vpop.f32.mrf.mxu0 }
 0x465   : > { %v1410_v44 = vpop.f32.mrf.mxu1  ;;  %v1409_v62 = vadd.f32 %v1408_v0, %v1334_v42 }
 0x466   : > { %v1336_v59 = vpop.f32.mrf.mxu0 }
 0x467   : > { %v1413_v38 = vmul.f32 0.5, %v1409_v62  ;;  %v1411_v30 = vadd.f32 %v1410_v44, %v1336_v59 }
 0x469   : > { %v1415_v49 = vadd.f32 1.0, %v1413_v38  ;;  %v1414_v57 = vmul.f32 0.5, %v1411_v30 }
 0x46b   : > { %v1420_v40 = vrot.slane %v1415_v49, %v2822_v48  ;;  %v1416_v33 = vadd.f32 1.0, %v1414_v57 }
 0x46d   : > { %v1425_v41 = vmul.f32 %v1420_v40, %v3252_v55  ;;  %v1427_v31 = vmul.f32 %v1420_v40, %v3253_v43  ;;  %v1429_v54 = vmul.f32 %v1420_v40, %v3254_v32  ;;  %v1431_v3 = vmul.f32 %v1420_v40, %v3255_v2 }
 0x46e   : > { %v1424_v4 = vrot.slane %v1416_v33, %v2822_v48 }
 0x46f   : > { %1433 = vst [vmem:[%s244_s28] sm:$0xff] %v1425_v41  ;;  %1435 = vst [vmem:[%s244_s28 + $0x10] sm:$0xff] %v1427_v31 }
 0x470   : > { %1437 = vst [vmem:[%s244_s28 + $0x20] sm:$0xff] %v1429_v54  ;;  %1439 = vst [vmem:[%s244_s28 + $0x30] sm:$0xff] %v1431_v3  ;;  %v1426_v6 = vmul.f32 %v1424_v4, %v3256_v5  ;;  %v1428_v8 = vmul.f32 %v1424_v4, %v3257_v7  ;;  %v1430_v48 = vmul.f32 %v1424_v4, %v3258_v9 }
 0x471   : > { %v1432_v11 = vmul.f32 %v1424_v4, %v3259_v10 }
 0x472   : > { %1434 = vst [vmem:[%s244_s28 + $0x8] sm:$0xff] %v1426_v6  ;;  %1436 = vst [vmem:[%s244_s28 + $0x18] sm:$0xff] %v1428_v8 }
 0x473   : > { %1438 = vst [vmem:[%s244_s28 + $0x28] sm:$0xff] %v1430_v48  ;;  %1440 = vst [vmem:[%s244_s28 + $0x38] sm:$0xff] %v1432_v11 }
 0x474   : > { %2040 = shalt.err (!%p2037_p3)
}
 0x475   : > { %s2041_s16 = scalar_lea.hbm %s3009_s11, 1024  ;;  %s2045_s18 = scalar_lea.hbm %s3065_s6, 2048 }
 0x476   : > { %p2042_p4 = scmp.ne.s32.totalorder %s3009_s11, %s2041_s16  ;;  %p2046_p9 = scmp.lt.s32.totalorder %s3009_s11, %s3065_s6 }
 0x477   : > { %p2047_p10 = scmp.lt.s32.totalorder %s2045_s18, %s2041_s16 }
 0x478   : > { %p2043_p7 = pnand %p2042_p4, %p2171_p5 }
 0x479   : > { %p2048_p11 = por %p2047_p10, %p2046_p9 }
 0x47a   : > { %p2044_p8 = pneg %p2043_p7 }
 0x47c   : > { %p2049_p12 = pnand %p2048_p11, %p2044_p8 }
 0x47e   : > { %2052 = shalt.err (!%p2049_p12)
}
 0x47f   : > { %s2096_s28 = smov 256   ;;  %s2097_s10 = smov 16  }
 0x480   : > { %1963 = dma.vmem_to_hbm [thread:$0]  (%p2171_p5), %s3011_s9, 1024, %s3009_s11, %s3019_s12, %s2096_s28, %s2096_s28, %s2097_s10  }
 0x481 PF: > { %p1969_p13 = scmp.ge.s32.totalorder %s2087_s24, 2  ;;  %s1470_s25 = sand.u32 1, %s2075_s21  }
 0x482   : > { %s1471_s13 = scalar_lea.sflag [#allocation3], %s1470_s25 }
 0x483   : > { %p1966_p0 = pnand %p1969_p13, %p2175_p6 }
 0x485   : > { %p1967_p1 = pneg %p1966_p0 }
 0x487   : > { %2070 = dma.done.wait (%p1967_p1), %s1471_s13, 1024  }
 0x488   : > { %2072 = vsyncadd (%p1967_p1), %s1471_s13, 4294966272  ;;  %p16_p2 = scmp.ge.s32.totalorder %s2158_s27, 4   ;;  %s3260_s21 = smov %s2079_s22 }
 0x489   : > { %s3261_s22 = smov %s2083_s23  ;;  %s3262_s23 = smov %s2169_s30 }
 0x48a   : > { %s3263_s24 = smov %s2158_s27  ;;  %18 = sbr.rel (!%p16_p2) target bundleno = 3 (0x3), region = 79 }
 0x48f   :  { %1476 = vsyncpa [#allocation3], 1 }
 0x490   :  { %1478 = vsyncpa [#allocation3 + $0x1], 1 }

</bundles_post_ra>
